<compile_context>
chip_gen: v7x
topology: tpu7x:2x2x1
jax: 0.10.0
libtpu: 0.0.40
codegen_flags: <defaults>
</compile_context>

<pallas_src>
import functools

import jax
import jax.numpy as jnp
from jax import lax
from jax.experimental import pallas as pl
from jax.experimental.pallas import tpu as pltpu

IN_F = 68 * 2      # 136
HID = 512
OUT_F = 6
OUT_T = 8          # final projection padded 6 -> 8 output rows (f32 sublane tile)
BN_EPS = 1e-5


def _round_up(x, m):
    return ((x + m - 1) // m) * m


def _net_kernel(x_ref, w1_ref, b1_ref, w2_ref, b2_ref, w3_ref, b3_ref, o_ref):
    """Fused MLP forward on one (TB, IN_F) batch tile.

    BatchNorm(eval) is folded into (w2, b2); Dropout is identity in eval.
    Input is read as f32 and cast to bf16 on-chip; matmuls accumulate in f32.
    """
    x = x_ref[...].astype(jnp.bfloat16)                              # (TB, 136)

    # Linear(136, 512) + ReLU
    h1 = jnp.dot(x, w1_ref[...], preferred_element_type=jnp.float32) + b1_ref[...]
    h1 = jnp.maximum(h1, 0.0).astype(jnp.bfloat16)

    # [BN folded into w2/b2]  Linear(512, 512) + ReLU
    h2 = jnp.dot(h1, w2_ref[...], preferred_element_type=jnp.float32) + b2_ref[...]
    h2 = jnp.maximum(h2, 0.0).astype(jnp.bfloat16)

    # Linear(512, 6) emitted transposed: (8, 512) x (TB, 512) -> (8, TB).
    # Lane dim of the output block is TB (multiple of 128) -> unmasked stores,
    # and writeback is 32 B/sample instead of 512 B/sample.
    out_t = lax.dot_general(
        w3_ref[...], h2,
        dimension_numbers=(((1,), (1,)), ((), ())),
        preferred_element_type=jnp.float32)                          # (8, TB)
    o_ref[...] = out_t + b3_ref[...]


def prepare_params(params, compute_dtype=jnp.bfloat16):
    """One-time prep: transpose, fold BN(eval) into Linear2, pad Linear3, cast."""
    (w1, b1, gamma, beta, rmean, rvar, w2, b2, w3, b3) = params

    # BN(eval) == per-feature affine: y = x*scale + shift
    scale = gamma / jnp.sqrt(rvar + BN_EPS)                          # (512,)
    shift = beta - rmean * scale                                     # (512,)

    # PyTorch Linear stores W as (out, in) and computes x @ W.T + b.
    w1_t = w1.T.astype(compute_dtype)                                # (136, 512)

    # Fold BN into Linear2:  (h*scale + shift) @ W2.T + b2
    #   = h @ (scale[:,None] * W2.T) + (shift @ W2.T + b2)
    w2_t = w2.T                                                      # (512, 512)
    w2_fold = (scale[:, None] * w2_t).astype(compute_dtype)          # (512, 512)
    b2_fold = (shift @ w2_t + b2).astype(jnp.float32)                # (512,)

    # Linear3 kept in (out, in) orientation, zero-padded 6 -> 8 rows.
    w3_pad = jnp.zeros((OUT_T, HID), compute_dtype).at[:OUT_F, :].set(
        w3.astype(compute_dtype))                                    # (8, 512)
    b3_pad = jnp.zeros((OUT_T, 1), jnp.float32).at[:OUT_F, 0].set(b3)

    return (
        w1_t,
        b1.astype(jnp.float32).reshape(1, HID),
        w2_fold,
        b2_fold.reshape(1, HID),
        w3_pad,
        b3_pad,
    )


@functools.partial(jax.jit, static_argnames=("block_b",))
def net_forward(landmark, prepared, block_b=1024):
    """landmark: (B, 68, 2) or (B, 136).  Returns (B, 6) float32."""
    w1_t, b1, w2_f, b2_f, w3_t, b3_t = prepared

    x = landmark.reshape(-1, IN_F)        # f32 view; cast happens inside kernel
    B = x.shape[0]

    # Batch tile: multiple of 128 (lane-dense transposed output).  When the
    # batch fits in <= 2*block_b, split it so >=2 grid steps exist and both
    # v7x TensorCores get work; cap at block_b (fits v5e's scoped VMEM too).
    half = max((B + 1) // 2, 1)
    tb = max(128, min(block_b, _round_up(half, 128)))
    b_pad = _round_up(B, tb)
    if b_pad != B:
        x = jnp.pad(x, ((0, b_pad - B), (0, 0)))
    grid = (b_pad // tb,)

    out_t = pl.pallas_call(
        _net_kernel,
        out_shape=jax.ShapeDtypeStruct((OUT_T, b_pad), jnp.float32),
        grid=grid,
        in_specs=[
            pl.BlockSpec((tb, IN_F), lambda i: (i, 0)),          # x: tiled over batch (f32)
            pl.BlockSpec((IN_F, HID), lambda i: (0, 0)),         # w1: resident
            pl.BlockSpec((1, HID), lambda i: (0, 0)),            # b1
            pl.BlockSpec((HID, HID), lambda i: (0, 0)),          # w2 (BN folded)
            pl.BlockSpec((1, HID), lambda i: (0, 0)),            # b2 (BN folded)
            pl.BlockSpec((OUT_T, HID), lambda i: (0, 0)),        # w3 (transposed, padded)
            pl.BlockSpec((OUT_T, 1), lambda i: (0, 0)),          # b3 (padded column)
        ],
        out_specs=pl.BlockSpec((OUT_T, tb), lambda i: (0, i)),   # transposed output
        compiler_params=pltpu.CompilerParams(
            dimension_semantics=("parallel",),
            vmem_limit_bytes=32 * 1024 * 1024),
    )(x, w1_t, b1, w2_f, b2_f, w3_t, b3_t)

    # Tiny (8, B) slab -> (B, 6).
    return out_t[:OUT_F, :B].T


def init_params(key):
    """Deterministic synthetic parameters with PyTorch-like shapes."""
    ks = jax.random.split(key, 8)

    def lin(k, out_f, in_f):
        kw, kb = jax.random.split(k)
        bound = 1.0 / jnp.sqrt(in_f)
        w = jax.random.uniform(kw, (out_f, in_f), jnp.float32, -bound, bound)
        b = jax.random.uniform(kb, (out_f,), jnp.float32, -bound, bound)
        return w, b

    w1, b1 = lin(ks[0], HID, IN_F)
    w2, b2 = lin(ks[1], HID, HID)
    w3, b3 = lin(ks[2], OUT_F, HID)

    # BatchNorm1d(512): affine params + running stats (perturbed so the BN
    # math is actually exercised).
    gamma = 1.0 + 0.1 * jax.random.normal(ks[3], (HID,), jnp.float32)
    beta = 0.1 * jax.random.normal(ks[4], (HID,), jnp.float32)
    rmean = 0.05 * jax.random.normal(ks[5], (HID,), jnp.float32)
    rvar = 1.0 + 0.1 * jax.random.uniform(ks[6], (HID,), jnp.float32)

    return (w1, b1, gamma, beta, rmean, rvar, w2, b2, w3, b3)


def _reference(landmark, params):
    """Pure-JAX f32 reference (same math as the PyTorch module in eval)."""
    x = landmark.reshape(-1, IN_F)
    (w1, b1, gamma, beta, rmean, rvar, w2, b2, w3, b3) = params
    h1 = jnp.maximum(x @ w1.T + b1, 0.0)
    h1 = (h1 - rmean) / jnp.sqrt(rvar + BN_EPS) * gamma + beta
    # Dropout(0.7) is identity in eval.
    h2 = jnp.maximum(h1 @ w2.T + b2, 0.0)
    return h2 @ w3.T + b3


if __name__ == "__main__":
    key = jax.random.PRNGKey(0)
    k_in1, k_in2, k_par = jax.random.split(key, 3)

    params = init_params(k_par)
    prepared = prepare_params(params)

    # Case 1: small batch (single grid step, padded batch tile).
    B1 = 8
    lm1 = jax.random.normal(k_in1, (B1, 68, 2), jnp.float32)
    out1 = jax.block_until_ready(net_forward(lm1, prepared))
    ref1 = _reference(lm1, params)
    assert out1.shape == (B1, OUT_F)
    assert jnp.allclose(out1, ref1, atol=5e-2, rtol=5e-2), "mismatch vs reference (B=8)"

    # Case 2: batch not divisible by the tile -> padding + multi-step grid.
    B2 = 300
    lm2 = jax.random.normal(k_in2, (B2, 68, 2), jnp.float32)
    out2 = jax.block_until_ready(net_forward(lm2, prepared, block_b=128))
    ref2 = _reference(lm2, params)
    assert out2.shape == (B2, OUT_F)
    assert jnp.allclose(out2, ref2, atol=5e-2, rtol=5e-2), "mismatch vs reference (B=300)"

    print("KERNEL_OK")
</pallas_src>

<mosaic_0001>
module attributes {stable_mosaic.version = 11 : i64} {
  func.func @_net_kernel(%arg0: i32, %arg1: memref<128x136xf32, #tpu.memory_space<vmem>>, %arg2: memref<136x512xbf16, #tpu.memory_space<vmem>>, %arg3: memref<1x512xf32, #tpu.memory_space<vmem>>, %arg4: memref<512x512xbf16, #tpu.memory_space<vmem>>, %arg5: memref<1x512xf32, #tpu.memory_space<vmem>>, %arg6: memref<8x512xbf16, #tpu.memory_space<vmem>>, %arg7: memref<8x1xf32, #tpu.memory_space<vmem>>, %arg8: memref<8x128xf32, #tpu.memory_space<vmem>>) attributes {dimension_semantics = [#tpu.dimension_semantics<parallel>], iteration_bounds = array<i64: 1>, scalar_prefetch = 0 : i64, scratch_operands = 0 : i64, tpu.core_type = #tpu.core_type<tc>, window_params = [{transform_indices = @transform_0, window_bounds = array<i64: 128, 136>}, {pipeline_mode = #tpu.pipeline_mode<synchronous>, transform_indices = @transform_1, window_bounds = array<i64: 136, 512>}, {pipeline_mode = #tpu.pipeline_mode<synchronous>, transform_indices = @transform_2, window_bounds = array<i64: 1, 512>}, {pipeline_mode = #tpu.pipeline_mode<synchronous>, transform_indices = @transform_3, window_bounds = array<i64: 512, 512>}, {pipeline_mode = #tpu.pipeline_mode<synchronous>, transform_indices = @transform_4, window_bounds = array<i64: 1, 512>}, {pipeline_mode = #tpu.pipeline_mode<synchronous>, transform_indices = @transform_5, window_bounds = array<i64: 8, 512>}, {pipeline_mode = #tpu.pipeline_mode<synchronous>, transform_indices = @transform_6, window_bounds = array<i64: 8, 1>}, {transform_indices = @transform_7, window_bounds = array<i64: 8, 128>}]} {
    %c0 = arith.constant 0 : index
    %c0_0 = arith.constant 0 : index
    %0 = vector.load %arg1[%c0, %c0_0] : memref<128x136xf32, #tpu.memory_space<vmem>>, vector<128x136xf32>
    %1 = arith.truncf %0 : vector<128x136xf32> to vector<128x136xbf16>
    %c0_1 = arith.constant 0 : index
    %c0_2 = arith.constant 0 : index
    %2 = vector.load %arg2[%c0_1, %c0_2] : memref<136x512xbf16, #tpu.memory_space<vmem>>, vector<136x512xbf16>
    %cst = arith.constant dense<0.000000e+00> : vector<128x512xf32>
    %3 = tpu.matmul %1, %2, %cst {dimension_numbers = #tpu.dot_dimension_numbers<[1], [0], [0], [1], [0, 0, 1, 1], [], []>} : vector<128x136xbf16>, vector<136x512xbf16>, vector<128x512xf32> -> vector<128x512xf32>
    %c0_3 = arith.constant 0 : index
    %c0_4 = arith.constant 0 : index
    %4 = vector.load %arg3[%c0_3, %c0_4] : memref<1x512xf32, #tpu.memory_space<vmem>>, vector<1x512xf32>
    %5 = vector.broadcast %4 : vector<1x512xf32> to vector<128x512xf32>
    %6 = arith.addf %3, %5 : vector<128x512xf32>
    %cst_5 = arith.constant 0.000000e+00 : f32
    %7 = vector.broadcast %cst_5 : f32 to vector<128x512xf32>
    %8 = arith.maximumf %6, %7 : vector<128x512xf32>
    %9 = arith.truncf %8 : vector<128x512xf32> to vector<128x512xbf16>
    %c0_6 = arith.constant 0 : index
    %c0_7 = arith.constant 0 : index
    %10 = vector.load %arg4[%c0_6, %c0_7] : memref<512x512xbf16, #tpu.memory_space<vmem>>, vector<512x512xbf16>
    %cst_8 = arith.constant dense<0.000000e+00> : vector<128x512xf32>
    %11 = tpu.matmul %9, %10, %cst_8 {dimension_numbers = #tpu.dot_dimension_numbers<[1], [0], [0], [1], [0, 0, 1, 1], [], []>} : vector<128x512xbf16>, vector<512x512xbf16>, vector<128x512xf32> -> vector<128x512xf32>
    %c0_9 = arith.constant 0 : index
    %c0_10 = arith.constant 0 : index
    %12 = vector.load %arg5[%c0_9, %c0_10] : memref<1x512xf32, #tpu.memory_space<vmem>>, vector<1x512xf32>
    %13 = vector.broadcast %12 : vector<1x512xf32> to vector<128x512xf32>
    %14 = arith.addf %11, %13 : vector<128x512xf32>
    %cst_11 = arith.constant 0.000000e+00 : f32
    %15 = vector.broadcast %cst_11 : f32 to vector<128x512xf32>
    %16 = arith.maximumf %14, %15 : vector<128x512xf32>
    %17 = arith.truncf %16 : vector<128x512xf32> to vector<128x512xbf16>
    %c0_12 = arith.constant 0 : index
    %c0_13 = arith.constant 0 : index
    %18 = vector.load %arg6[%c0_12, %c0_13] : memref<8x512xbf16, #tpu.memory_space<vmem>>, vector<8x512xbf16>
    %cst_14 = arith.constant dense<0.000000e+00> : vector<8x128xf32>
    %19 = tpu.matmul %18, %17, %cst_14 {dimension_numbers = #tpu.dot_dimension_numbers<[1], [1], [0], [0], [0, 0, 1, 0], [], []>} : vector<8x512xbf16>, vector<128x512xbf16>, vector<8x128xf32> -> vector<8x128xf32>
    %c0_15 = arith.constant 0 : index
    %c0_16 = arith.constant 0 : index
    %20 = vector.load %arg7[%c0_15, %c0_16] : memref<8x1xf32, #tpu.memory_space<vmem>>, vector<8x1xf32>
    %21 = vector.broadcast %20 : vector<8x1xf32> to vector<8x128xf32>
    %22 = arith.addf %19, %21 : vector<8x128xf32>
    %c0_17 = arith.constant 0 : index
    %c0_18 = arith.constant 0 : index
    %23 = vector.load %arg8[%c0_17, %c0_18] : memref<8x128xf32, #tpu.memory_space<vmem>>, vector<8x128xf32>
    tpu.vector_store %arg8[%c0_17, %c0_18], %22 {strides = array<i32>} : memref<8x128xf32, #tpu.memory_space<vmem>>, vector<8x128xf32>,
    return
  }
  func.func @transform_0(%arg0: i32) -> (i32, i32) {
    %c0_i32 = arith.constant 0 : i32
    %c0_i32_0 = arith.constant 0 : i32
    return %arg0, %c0_i32 : i32, i32
  }
  func.func @transform_1(%arg0: i32) -> (i32, i32) {
    %c0_i32 = arith.constant 0 : i32
    %c0_i32_0 = arith.constant 0 : i32
    %c0_i32_1 = arith.constant 0 : i32
    return %c0_i32, %c0_i32_0 : i32, i32
  }
  func.func @transform_2(%arg0: i32) -> (i32, i32) {
    %c0_i32 = arith.constant 0 : i32
    %c0_i32_0 = arith.constant 0 : i32
    %c0_i32_1 = arith.constant 0 : i32
    return %c0_i32, %c0_i32_0 : i32, i32
  }
  func.func @transform_3(%arg0: i32) -> (i32, i32) {
    %c0_i32 = arith.constant 0 : i32
    %c0_i32_0 = arith.constant 0 : i32
    %c0_i32_1 = arith.constant 0 : i32
    return %c0_i32, %c0_i32_0 : i32, i32
  }
  func.func @transform_4(%arg0: i32) -> (i32, i32) {
    %c0_i32 = arith.constant 0 : i32
    %c0_i32_0 = arith.constant 0 : i32
    %c0_i32_1 = arith.constant 0 : i32
    return %c0_i32, %c0_i32_0 : i32, i32
  }
  func.func @transform_5(%arg0: i32) -> (i32, i32) {
    %c0_i32 = arith.constant 0 : i32
    %c0_i32_0 = arith.constant 0 : i32
    %c0_i32_1 = arith.constant 0 : i32
    return %c0_i32, %c0_i32_0 : i32, i32
  }
  func.func @transform_6(%arg0: i32) -> (i32, i32) {
    %c0_i32 = arith.constant 0 : i32
    %c0_i32_0 = arith.constant 0 : i32
    %c0_i32_1 = arith.constant 0 : i32
    return %c0_i32, %c0_i32_0 : i32, i32
  }
  func.func @transform_7(%arg0: i32) -> (i32, i32) {
    %c0_i32 = arith.constant 0 : i32
    %c0_i32_0 = arith.constant 0 : i32
    return %c0_i32, %arg0 : i32, i32
  }
}

</mosaic_0001>

<bundles_post_ra>
// kernel: net_forward.1
= control target key start
LH: loop header
LB: loop body
LE: loop exit
PB: predicated region body
PF: predicated region fallthrough
CT: control target
= control target key end

     0   :  { %12 = vsyncpa [#allocation3], 0  ;;  %s2714_s24 = smov [#allocation2]   ;;  %s3268_s0 = inlined_call_operand.vmem [shape: f32[128,136], index: 0, kind: input, shape index: {}]   ;;  %s3269_s1 = inlined_call_operand.vmem [shape: bf16[136,512], index: 1, kind: input, shape index: {}]   ;;  %s3270_s2 = inlined_call_operand.vmem [shape: f32[1,512], index: 2, kind: input, shape index: {}]   ;;  %s3271_s3 = inlined_call_operand.hbm [shape: bf16[512,512], index: 3, kind: input, shape index: {}]   ;;  %s3272_s4 = inlined_call_operand.vmem [shape: f32[1,512], index: 4, kind: input, shape index: {}]   ;;  %s3273_s5 = inlined_call_operand.vmem [shape: bf16[8,512], index: 5, kind: input, shape index: {}]   ;;  %s3274_s6 = inlined_call_operand.vmem [shape: f32[8,1], index: 6, kind: input, shape index: {}]   ;;  %s3275_s7 = inlined_call_operand.vmem [shape: f32[8,128], index: 7, kind: output, shape index: {}]  }
   0x1   :  { %s24_s25 = sshll.u32 %s2714_s24, 4  ;;  %s2690_s28 = scalar_lea.hbm %s3271_s3, 16384  ;;  %s25_s25 = int_to_ptr.vmem [resolvable:$true] %s24_s25 }
   0x2   :  { %p2691_p0 = scmp.ne.s32.totalorder %s3271_s3, %s2690_s28  ;;  %p2694_p1 = scmp.lt.u32.totalorder %s2690_s28, %s3271_s3 }
   0x4   :  { %p2696_p2 = pnand %p2694_p1, %p2691_p0 }
   0x6   :  { %2699 = shalt.err (!%p2696_p2)
}
   0x7   :  { %s2700_s10 = scalar_lea.vmem %s25_s25, 16384  ;;  %p2705_p4 = scmp.lt.s32.totalorder %s25_s25, %s25_s25 }
   0x8   :  { %p2701_p3 = scmp.ne.s32.totalorder %s25_s25, %s2700_s10  ;;  %p2706_p5 = scmp.lt.s32.totalorder %s2700_s10, %s2700_s10 }
   0xa   :  { %p2707_p6 = por %p2706_p5, %p2705_p4 }
   0xc   :  { %p2708_p7 = pnand %p2707_p6, %p2701_p3 }
   0xe   :  { %2711 = shalt.err (!%p2708_p7)
}
   0xf   :  { %s2715_s11 = smov 256   ;;  %s2716_s12 = smov 16  }
  0x10   :  { %30 = dma.hbm_to_vmem [thread:$0]  %s3271_s3, 16384, %s25_s25, [#allocation3], %s2715_s11, %s2715_s11, %s2716_s12  }
  0x11   :  { %2712 = dma.done.wait [#allocation3], 16384  }
  0x12   :  { %2713 = vsyncadd [#allocation3], 4294950912  ;;  %v2442_v0 = vld [vmem:[%s3269_s1 + $0x4] ss:$16 sps:$4 sm:$0xff]   ;;  %v2444_v1 = vld [vmem:[%s3269_s1] ss:$16 sps:$4 sm:$0xff]  }
  0x13   :  { %353 = vmatprep.subr.bf16.mxu0 %v2442_v0  ;;  %v2445_v2 = vld [vmem:[%s3269_s1 + $0x24] ss:$16 sps:$4 sm:$0xff]   ;;  %v2447_v3 = vld [vmem:[%s3269_s1 + $0x20] ss:$16 sps:$4 sm:$0xff]   ;;  %v42_v8 = vld [vmem:[%s3268_s0 + $0x8] sm:$0xff]  ;;  %vm315_vm0 = vcmask 64512  }
  0x14   :  { %354 = vmatpush1.bf16.msra.mxu0 %v2444_v1  ;;  %v2448_v4 = vld [vmem:[%s3269_s1 + $0x44] ss:$16 sps:$4 sm:$0xff]   ;;  %v2450_v5 = vld [vmem:[%s3269_s1 + $0x40] ss:$16 sps:$4 sm:$0xff]   ;;  %v44_v9 = vld [vmem:[%s3268_s0 + $0x18] sm:$0xff]  ;;  %vm340_vm1 = vcmask 1043456  }
  0x15   :  { %355 = vmatprep.subr.bf16.mxu0 %v2445_v2  ;;  %v2451_v6 = vld [vmem:[%s3269_s1 + $0x64] ss:$16 sps:$4 sm:$0xff]   ;;  %v2453_v7 = vld [vmem:[%s3269_s1 + $0x60] ss:$16 sps:$4 sm:$0xff]   ;;  %v74_v11 = vpack.c.bf16 %v44_v9, %v42_v8  ;;  %v2468_v14 = vld [vmem:[%s3269_s1 + $0xc] ss:$16 sps:$4 sm:$0xff]  }
  0x16   :  { %v2454_v10 = vld [vmem:[%s3269_s1 + $0x84] ss:$16 sps:$4 sm:$0xff]   ;;  %v2456_v12 = vld [vmem:[%s3269_s1 + $0x80] ss:$16 sps:$4 sm:$0xff]   ;;  %v2470_v15 = vld [vmem:[%s3269_s1 + $0x8] ss:$16 sps:$4 sm:$0xff]   ;;  %466 = vmatprep.subr.bf16.mxu1 %v2468_v14 }
  0x17   :  { %2158 = vmatprep.mubr.msk.bf16.mxu0 %vm315_vm0, %v74_v11  ;;  %2167 = vmatprep.mubr.msk.bf16.mxu1 %vm315_vm0, %v74_v11  ;;  %v2457_v13 = vld [vmem:[%s3269_s1 + $0xa4] ss:$16 sps:$4 sm:$0xff]   ;;  %v2471_v16 = vld [vmem:[%s3269_s1 + $0x2c] ss:$16 sps:$4 sm:$0xff]   ;;  %v2459_v17 = vld [vmem:[%s3269_s1 + $0xa0] ss:$16 sps:$4 sm:$0xff]  }
  0x18   :  { %356 = vmatpush1.bf16.msra.mxu0 %v2447_v3  ;;  %v2460_v18 = vld [vmem:[%s3269_s1 + $0xc4] ss:$16 sps:$4 sm:$0xff]   ;;  %467 = vmatpush1.bf16.msra.mxu1 %v2470_v15  ;;  %v2473_v19 = vld [vmem:[%s3269_s1 + $0x28] ss:$16 sps:$4 sm:$0xff]   ;;  %v2474_v20 = vld [vmem:[%s3269_s1 + $0x4c] ss:$16 sps:$4 sm:$0xff]  }
  0x19   :  { %357 = vmatprep.subr.bf16.mxu0 %v2448_v4  ;;  %468 = vmatprep.subr.bf16.mxu1 %v2471_v16  ;;  %v2462_v21 = vld [vmem:[%s3269_s1 + $0xc0] ss:$16 sps:$4 sm:$0xff]   ;;  %v2463_v22 = vld [vmem:[%s3269_s1 + $0xe4] ss:$16 sps:$4 sm:$0xff]   ;;  %v2476_v23 = vld [vmem:[%s3269_s1 + $0x48] ss:$16 sps:$4 sm:$0xff]  }
  0x1a   :  { %v121_v24 = vld [vmem:[%s3269_s1 + $0x100] sm:$0xff]  ;;  %v2477_v25 = vld [vmem:[%s3269_s1 + $0x6c] ss:$16 sps:$4 sm:$0xff]   ;;  %v2479_v29 = vld [vmem:[%s3269_s1 + $0x68] ss:$16 sps:$4 sm:$0xff]  }
  0x1b   :  { %v2465_v26 = vld [vmem:[%s3269_s1 + $0xe0] ss:$16 sps:$4 sm:$0xff]   ;;  %v2154_v27 = vcombine.high %v121_v24, %v121_v24  ;;  %v2153_v28 = vcombine.low %v121_v24, %v121_v24  ;;  %v2480_v30 = vld [vmem:[%s3269_s1 + $0x8c] ss:$16 sps:$4 sm:$0xff]   ;;  %v2482_v36 = vld [vmem:[%s3269_s1 + $0x88] ss:$16 sps:$4 sm:$0xff]  }
  0x1c   :  { %358 = vmatpush1.bf16.msra.mxu0 %v2450_v5  ;;  %469 = vmatpush1.bf16.msra.mxu1 %v2473_v19  ;;  %v41_v31 = vld [vmem:[%s3268_s0] sm:$0xff]  ;;  %v43_v32 = vld [vmem:[%s3268_s0 + $0x10] sm:$0xff]  ;;  %v46_v33 = vld [vmem:[%s3268_s0 + $0x28] sm:$0xff] }
  0x1d   :  { %359 = vmatprep.subr.bf16.mxu0 %v2451_v6  ;;  %470 = vmatprep.subr.bf16.mxu1 %v2474_v20  ;;  %v342_v34 = vsel %vm340_vm1, %v2153_v28, 0  ;;  %v48_v35 = vld [vmem:[%s3268_s0 + $0x38] sm:$0xff]  ;;  %v2496_v38 = vld [vmem:[#allocation2 + $0x4] ss:$16 sps:$4 sm:$0xff]   ;;  %v2876_v39 = vpack.c.bf16 %v43_v32, %v41_v31  ;;  %v2494_v41 = vld [vmem:[#allocation2] ss:$16 sps:$4 sm:$0xff]  }
  0x1e   :  { %v2483_v37 = vld [vmem:[%s3269_s1 + $0xac] ss:$16 sps:$4 sm:$0xff]   ;;  %v2878_v40 = vpack.c.bf16 %v48_v35, %v46_v33  ;;  %v2485_v42 = vld [vmem:[%s3269_s1 + $0xa8] ss:$16 sps:$4 sm:$0xff]   ;;  %v2502_v43 = vld [vmem:[#allocation2 + $0x24] ss:$16 sps:$4 sm:$0xff]  }
  0x1f   :  { %v45_v44 = vld [vmem:[%s3268_s0 + $0x20] sm:$0xff]  ;;  %v47_v45 = vld [vmem:[%s3268_s0 + $0x30] sm:$0xff]  ;;  %v2486_v46 = vld [vmem:[%s3269_s1 + $0xcc] ss:$16 sps:$4 sm:$0xff]  }
  0x20   :  { %360 = vmatpush1.bf16.msra.mxu0 %v2453_v7  ;;  %471 = vmatpush1.bf16.msra.mxu1 %v2476_v23  ;;  %v50_v47 = vld [vmem:[%s3268_s0 + $0x48] sm:$0xff]  ;;  %v52_v48 = vld [vmem:[%s3268_s0 + $0x58] sm:$0xff]  ;;  %v2500_v49 = vld [vmem:[#allocation2 + $0x20] ss:$16 sps:$4 sm:$0xff]   ;;  %v2907_v53 = vpack.c.bf16 %v47_v45, %v45_v44 }
  0x21   :  { %361 = vmatprep.subr.bf16.mxu0 %v2454_v10  ;;  %472 = vmatprep.subr.bf16.mxu1 %v2477_v25  ;;  %v2488_v50 = vld [vmem:[%s3269_s1 + $0xc8] ss:$16 sps:$4 sm:$0xff]   ;;  %v2508_v51 = vld [vmem:[#allocation2 + $0x44] ss:$16 sps:$4 sm:$0xff]   ;;  %v2489_v52 = vld [vmem:[%s3269_s1 + $0xec] ss:$16 sps:$4 sm:$0xff]   ;;  %v2912_v55 = vpack.c.bf16 %v52_v48, %v50_v47 }
  0x22   :  { %v122_v54 = vld [vmem:[%s3269_s1 + $0x108] sm:$0xff]  ;;  %v2506_v56 = vld [vmem:[#allocation2 + $0x40] ss:$16 sps:$4 sm:$0xff]   ;;  %v2514_v58 = vld [vmem:[#allocation2 + $0x64] ss:$16 sps:$4 sm:$0xff]  }
  0x23   :  { %v2491_v57 = vld [vmem:[%s3269_s1 + $0xe8] ss:$16 sps:$4 sm:$0xff]   ;;  %v49_v59 = vld [vmem:[%s3268_s0 + $0x40] sm:$0xff]  ;;  %v51_v60 = vld [vmem:[%s3268_s0 + $0x50] sm:$0xff]  ;;  %v2156_v61 = vcombine.high %v122_v54, %v122_v54  ;;  %v2155_v62 = vcombine.low %v122_v54, %v122_v54 }
  0x24   :  { %362 = vmatpush1.bf16.msra.mxu0 %v2456_v12  ;;  %473 = vmatpush1.bf16.msra.mxu1 %v2479_v29  ;;  %v54_v63 = vld [vmem:[%s3268_s0 + $0x68] sm:$0xff]  ;;  %v2512_v0 = vld [vmem:[#allocation2 + $0x60] ss:$16 sps:$4 sm:$0xff]   ;;  %v56_v1 = vld [vmem:[%s3268_s0 + $0x78] sm:$0xff]  ;;  %v2934_v5 = vpack.c.bf16 %v51_v60, %v49_v59 }
  0x25   :  { %363 = vmatprep.subr.bf16.mxu0 %v2457_v13  ;;  %474 = vmatprep.subr.bf16.mxu1 %v2480_v30  ;;  %v2520_v2 = vld [vmem:[#allocation2 + $0x84] ss:$16 sps:$4 sm:$0xff]   ;;  %v348_v3 = vsel %vm340_vm1, %v2155_v62, 0  ;;  %v2499_v4 = vld [vmem:[#allocation2 + $0xc] ss:$16 sps:$4 sm:$0xff]   ;;  %v2936_v6 = vpack.c.bf16 %v56_v1, %v54_v63 }
  0x26   :  { %v2497_v7 = vld [vmem:[#allocation2 + $0x8] ss:$16 sps:$4 sm:$0xff]   ;;  %v53_v8 = vld [vmem:[%s3268_s0 + $0x60] sm:$0xff]  ;;  %v55_v9 = vld [vmem:[%s3268_s0 + $0x70] sm:$0xff] }
  0x27   :  { %v2505_v10 = vld [vmem:[#allocation2 + $0x2c] ss:$16 sps:$4 sm:$0xff]   ;;  %v2518_v11 = vld [vmem:[#allocation2 + $0x80] ss:$16 sps:$4 sm:$0xff]   ;;  %v2526_v12 = vld [vmem:[#allocation2 + $0xa4] ss:$16 sps:$4 sm:$0xff]  }
  0x28   :  { %364 = vmatpush1.bf16.msra.mxu0 %v2459_v17  ;;  %475 = vmatpush1.bf16.msra.mxu1 %v2482_v36  ;;  %v58_v13 = vld [vmem:[%s3268_s0 + $0x88] sm:$0xff]  ;;  %v60_v14 = vld [vmem:[%s3268_s0 + $0x98] sm:$0xff]  ;;  %v2524_v17 = vld [vmem:[#allocation2 + $0xa0] ss:$16 sps:$4 sm:$0xff]  }
  0x29   :  { %365 = vmatprep.subr.bf16.mxu0 %v2460_v18  ;;  %476 = vmatprep.subr.bf16.mxu1 %v2483_v37  ;;  %v2503_v15 = vld [vmem:[#allocation2 + $0x28] ss:$16 sps:$4 sm:$0xff]   ;;  %v2511_v16 = vld [vmem:[#allocation2 + $0x4c] ss:$16 sps:$4 sm:$0xff]   ;;  %v2956_v18 = vpack.c.bf16 %v55_v9, %v53_v8  ;;  %v2532_v19 = vld [vmem:[#allocation2 + $0xc4] ss:$16 sps:$4 sm:$0xff]   ;;  %v2958_v20 = vpack.c.bf16 %v60_v14, %v58_v13 }
  0x2a   :  { %v59_v23 = vld [vmem:[%s3268_s0 + $0x90] sm:$0xff]  ;;  %v2517_v24 = vld [vmem:[#allocation2 + $0x6c] ss:$16 sps:$4 sm:$0xff]   ;;  %v2515_v29 = vld [vmem:[#allocation2 + $0x68] ss:$16 sps:$4 sm:$0xff]  }
  0x2b   :  { %v2530_v25 = vld [vmem:[#allocation2 + $0xc0] ss:$16 sps:$4 sm:$0xff]   ;;  %v64_v28 = vld [vmem:[%s3268_s0 + $0xb8] sm:$0xff]  ;;  %v2544_v33 = vld [vmem:[#allocation2 + $0x104] ss:$16 sps:$4 sm:$0xff]  }
  0x2c   :  { %366 = vmatpush1.bf16.msra.mxu0 %v2462_v21  ;;  %477 = vmatpush1.bf16.msra.mxu1 %v2485_v42  ;;  %v2509_v21 = vld [vmem:[#allocation2 + $0x48] ss:$16 sps:$4 sm:$0xff]   ;;  %v2523_v30 = vld [vmem:[#allocation2 + $0x8c] ss:$16 sps:$4 sm:$0xff]   ;;  %v2536_v31 = vld [vmem:[#allocation2 + $0xe0] ss:$16 sps:$4 sm:$0xff]  }
  0x2d   :  { %367 = vmatprep.subr.bf16.mxu0 %v2463_v22  ;;  %478 = vmatprep.subr.bf16.mxu1 %v2486_v46  ;;  %v57_v22 = vld [vmem:[%s3268_s0 + $0x80] sm:$0xff]  ;;  %v2521_v35 = vld [vmem:[#allocation2 + $0x88] ss:$16 sps:$4 sm:$0xff]   ;;  %v63_v37 = vld [vmem:[%s3268_s0 + $0xb0] sm:$0xff] }
  0x2e   :  { %v2978_v32 = vpack.c.bf16 %v59_v23, %v57_v22  ;;  %v61_v36 = vld [vmem:[%s3268_s0 + $0xa0] sm:$0xff]  ;;  %v2527_v42 = vld [vmem:[#allocation2 + $0xa8] ss:$16 sps:$4 sm:$0xff]   ;;  %v2535_v44 = vld [vmem:[#allocation2 + $0xcc] ss:$16 sps:$4 sm:$0xff]  }
  0x2f   :  { %v2548_v45 = vld [vmem:[#allocation2 + $0x120] ss:$16 sps:$4 sm:$0xff]   ;;  %v2556_v46 = vld [vmem:[#allocation2 + $0x144] ss:$16 sps:$4 sm:$0xff]   ;;  %v83_v47 = vpack.c.bf16 %v63_v37, %v61_v36  ;;  %v2533_v48 = vld [vmem:[#allocation2 + $0xc8] ss:$16 sps:$4 sm:$0xff]  }
  0x30   :  { %368 = vmatpush1.bf16.msra.mxu0 %v2465_v26  ;;  %479 = vmatpush1.bf16.msra.mxu1 %v2488_v50  ;;  %v2538_v26 = vld [vmem:[#allocation2 + $0xe4] ss:$16 sps:$4 sm:$0xff]   ;;  %v2541_v50 = vld [vmem:[#allocation2 + $0xec] ss:$16 sps:$4 sm:$0xff]   ;;  %v2560_v59 = vld [vmem:[#allocation2 + $0x160] ss:$16 sps:$4 sm:$0xff]  }
  0x31   :  { %2157 = vmatprep.subr.msk.bf16.mxu0 %vm340_vm1, %v2154_v27  ;;  %480 = vmatprep.subr.bf16.mxu1 %v2489_v52  ;;  %v62_v27 = vld [vmem:[%s3268_s0 + $0xa8] sm:$0xff]  ;;  %v2562_v52 = vld [vmem:[#allocation2 + $0x164] ss:$16 sps:$4 sm:$0xff]   ;;  %v2566_v1 = vld [vmem:[#allocation2 + $0x180] ss:$16 sps:$4 sm:$0xff]  }
  0x32   :  { %v67_v54 = vld [vmem:[%s3268_s0 + $0xd0] sm:$0xff]  ;;  %v2545_v62 = vld [vmem:[#allocation2 + $0x108] ss:$16 sps:$4 sm:$0xff]   ;;  %v2577_v14 = vld [vmem:[#allocation2 + $0x1ac] ss:$16 sps:$4 sm:$0xff]  }
  0x33   :  { %v2568_v60 = vld [vmem:[#allocation2 + $0x184] ss:$16 sps:$4 sm:$0xff]   ;;  %v2557_v9 = vld [vmem:[#allocation2 + $0x148] ss:$16 sps:$4 sm:$0xff]   ;;  %v2584_v22 = vld [vmem:[#allocation2 + $0x1e0] ss:$16 sps:$4 sm:$0xff]  }
  0x34   :  { %370 = vmatpush1.bf16.msra.mxu0 %v342_v34  ;;  %481 = vmatpush1.bf16.msra.mxu1 %v2491_v57  ;;  %v2980_v34 = vpack.c.bf16 %v64_v28, %v62_v27  ;;  %v2539_v57 = vld [vmem:[#allocation2 + $0xe8] ss:$16 sps:$4 sm:$0xff]  }
  0x35   :  { %1465 = vmatprep.subr.bf16.mxu0 %v2496_v38  ;;  %2166 = vmatprep.subr.msk.bf16.mxu1 %vm340_vm1, %v2156_v61  ;;  %v2529_v38 = vld [vmem:[#allocation2 + $0xac] ss:$16 sps:$4 sm:$0xff]   ;;  %v2569_v13 = vld [vmem:[#allocation2 + $0x188] ss:$16 sps:$4 sm:$0xff]  }
  0x36   :  { %v2587_v23 = vld [vmem:[#allocation2 + $0x1e8] ss:$16 sps:$4 sm:$0xff]  }
  0x37   :  { %386 = vmatmul.mubr.bf16.vlgmr.msra.gmra.mrb[0].mxu0 %v2876_v39 }
  0x38   :  { %2159 = vmatprep.mubr.msk.bf16.mxu0 %vm315_vm0, %v2878_v40  ;;  %1466 = vmatpush1.bf16.msra.mxu0 %v2494_v41  ;;  %v68_v41 = vld [vmem:[%s3268_s0 + $0xd8] sm:$0xff] }
  0x39   :  { %1467 = vmatprep.subr.bf16.mxu0 %v2502_v43  ;;  %483 = vmatpush1.bf16.msra.mxu1 %v348_v3  ;;  %v2550_v43 = vld [vmem:[#allocation2 + $0x124] ss:$16 sps:$4 sm:$0xff]  }
  0x3a   :  { %1691 = vmatprep.subr.bf16.mxu1 %v2499_v4  ;;  %v69_v3 = vld [vmem:[%s3268_s0 + $0xe0] sm:$0xff]  ;;  %v71_v4 = vld [vmem:[%s3268_s0 + $0xf0] sm:$0xff] }
  0x3b   :  { %v87_v8 = vpack.c.bf16 %v71_v4, %v69_v3 }
  0x3c   :  { %1468 = vmatpush1.bf16.msra.mxu0 %v2500_v49  ;;  %499 = vmatmul.mubr.bf16.vlgmr.msra.gmra.mrb[0].mxu1 %v2876_v39  ;;  %v2542_v39 = vld [vmem:[#allocation2 + $0x100] ss:$16 sps:$4 sm:$0xff]  }
  0x3d   :  { %1469 = vmatprep.subr.bf16.mxu0 %v2508_v51  ;;  %2168 = vmatprep.mubr.msk.bf16.mxu1 %vm315_vm0, %v2878_v40  ;;  %v66_v40 = vld [vmem:[%s3268_s0 + $0xc8] sm:$0xff]  ;;  %v2554_v51 = vld [vmem:[#allocation2 + $0x140] ss:$16 sps:$4 sm:$0xff]  }
  0x3e   :  { %1692 = vmatpush1.bf16.msra.mxu1 %v2497_v7  ;;  %v86_v49 = vpack.c.bf16 %v68_v41, %v66_v40  ;;  %v2572_v7 = vld [vmem:[#allocation2 + $0x1a0] ss:$16 sps:$4 sm:$0xff]  }
  0x3f   :  { %396 = vmatmul.mubr.bf16.gmra.mrb[4].mxu0 %v2907_v53  ;;  %1693 = vmatprep.subr.bf16.mxu1 %v2505_v10  ;;  %v2565_v10 = vld [vmem:[#allocation2 + $0x16c] ss:$16 sps:$4 sm:$0xff]  }
  0x40   :  { %2160 = vmatprep.mubr.msk.bf16.mxu0 %vm315_vm0, %v2912_v55  ;;  %1470 = vmatpush1.bf16.msra.mxu0 %v2506_v56  ;;  %v72_v56 = vld [vmem:[%s3268_s0 + $0xf8] sm:$0xff] }
  0x41   :  { %1471 = vmatprep.subr.bf16.mxu0 %v2514_v58  ;;  %v2547_v58 = vld [vmem:[#allocation2 + $0x10c] ss:$16 sps:$4 sm:$0xff]  }
  0x42   :  { %1694 = vmatpush1.bf16.msra.mxu1 %v2503_v15  ;;  %v2575_v15 = vld [vmem:[#allocation2 + $0x1a8] ss:$16 sps:$4 sm:$0xff]  }
  0x43   :  { %1695 = vmatprep.subr.bf16.mxu1 %v2511_v16  ;;  %v2580_v16 = vld [vmem:[#allocation2 + $0x1c4] ss:$16 sps:$4 sm:$0xff]  }
  0x44   :  { %1472 = vmatpush1.bf16.msra.mxu0 %v2512_v0  ;;  %509 = vmatmul.mubr.bf16.gmra.mrb[4].mxu1 %v2907_v53  ;;  %v65_v53 = vld [vmem:[%s3268_s0 + $0xc0] sm:$0xff]  ;;  %v2553_v0 = vld [vmem:[#allocation2 + $0x12c] ss:$16 sps:$4 sm:$0xff]  }
  0x45   :  { %1473 = vmatprep.subr.bf16.mxu0 %v2520_v2  ;;  %2169 = vmatprep.mubr.msk.bf16.mxu1 %vm315_vm0, %v2912_v55  ;;  %v70_v55 = vld [vmem:[%s3268_s0 + $0xe8] sm:$0xff]  ;;  %v85_v61 = vpack.c.bf16 %v67_v54, %v65_v53  ;;  %v2574_v2 = vld [vmem:[#allocation2 + $0x1a4] ss:$16 sps:$4 sm:$0xff]  }
  0x46   :  { %1696 = vmatpush1.bf16.msra.mxu1 %v2509_v21  ;;  %v88_v63 = vpack.c.bf16 %v72_v56, %v70_v55  ;;  %v2589_v21 = vld [vmem:[#allocation2 + $0x1ec] ss:$16 sps:$4 sm:$0xff]  }
  0x47   :  { %406 = vmatmul.mubr.bf16.gmra.mrb[8].mxu0 %v2934_v5  ;;  %1697 = vmatprep.subr.bf16.mxu1 %v2517_v24  ;;  %v2592_v24 = vld [vmem:[#allocation2 + $0x204] ss:$16 sps:$4 sm:$0xff]   ;;  %v2601_v53 = vld [vmem:[#allocation2 + $0x22c] ss:$16 sps:$4 sm:$0xff]  }
  0x48   :  { %2161 = vmatprep.mubr.msk.bf16.mxu0 %vm315_vm0, %v2936_v6  ;;  %1474 = vmatpush1.bf16.msra.mxu0 %v2518_v11  ;;  %v2563_v11 = vld [vmem:[#allocation2 + $0x168] ss:$16 sps:$4 sm:$0xff]  }
  0x49   :  { %1475 = vmatprep.subr.bf16.mxu0 %v2526_v12  ;;  %v2571_v12 = vld [vmem:[#allocation2 + $0x18c] ss:$16 sps:$4 sm:$0xff]  }
  0x4a   :  { %1698 = vmatpush1.bf16.msra.mxu1 %v2515_v29  ;;  %v123_v29 = vld [vmem:[%s3270_s2] sm:$0xf] }
  0x4b   :  { %1699 = vmatprep.subr.bf16.mxu1 %v2523_v30 }
  0x4c   :  { %1476 = vmatpush1.bf16.msra.mxu0 %v2524_v17  ;;  %519 = vmatmul.mubr.bf16.gmra.mrb[8].mxu1 %v2934_v5  ;;  %v2551_v5 = vld [vmem:[#allocation2 + $0x128] ss:$16 sps:$4 sm:$0xff]   ;;  %v2583_v17 = vld [vmem:[#allocation2 + $0x1cc] ss:$16 sps:$4 sm:$0xff]  }
  0x4d   :  { %1477 = vmatprep.subr.bf16.mxu0 %v2532_v19  ;;  %2170 = vmatprep.mubr.msk.bf16.mxu1 %vm315_vm0, %v2936_v6  ;;  %v2559_v6 = vld [vmem:[#allocation2 + $0x14c] ss:$16 sps:$4 sm:$0xff]   ;;  %v2581_v19 = vld [vmem:[#allocation2 + $0x1c8] ss:$16 sps:$4 sm:$0xff]  }
  0x4e   :  { %1700 = vmatpush1.bf16.msra.mxu1 %v2521_v35 }
  0x4f   :  { %416 = vmatmul.mubr.bf16.gmra.mrb[12].mxu0 %v2956_v18  ;;  %1701 = vmatprep.subr.bf16.mxu1 %v2529_v38 }
  0x50   :  { %2162 = vmatprep.mubr.msk.bf16.mxu0 %vm315_vm0, %v2958_v20  ;;  %1478 = vmatpush1.bf16.msra.mxu0 %v2530_v25  ;;  %v2595_v25 = vld [vmem:[#allocation2 + $0x20c] ss:$16 sps:$4 sm:$0xff]  }
  0x51   :  { %1479 = vmatprep.subr.bf16.mxu0 %v2538_v26  ;;  %v125_v26 = vlaneseq }
  0x52   :  { %1702 = vmatpush1.bf16.msra.mxu1 %v2527_v42 }
  0x53   :  { %1703 = vmatprep.subr.bf16.mxu1 %v2535_v44  ;;  %v3028_v27 = vshrl.u32 %v125_v26, 7 }
  0x54   :  { %1480 = vmatpush1.bf16.msra.mxu0 %v2536_v31  ;;  %529 = vmatmul.mubr.bf16.gmra.mrb[12].mxu1 %v2956_v18  ;;  %v2578_v18 = vld [vmem:[#allocation2 + $0x1c0] ss:$16 sps:$4 sm:$0xff]  }
  0x55   :  { %1481 = vmatprep.subr.bf16.mxu0 %v2544_v33  ;;  %2171 = vmatprep.mubr.msk.bf16.mxu1 %vm315_vm0, %v2958_v20  ;;  %v2586_v20 = vld [vmem:[#allocation2 + $0x1e4] ss:$16 sps:$4 sm:$0xff]   ;;  %v127_v28 = vsub.s32 0, %v3028_v27  ;;  %v131_v30 = vsub.s32 1, %v3028_v27  ;;  %v135_v56 = vsub.s32 2, %v3028_v27 }
  0x56   :  { %1704 = vmatpush1.bf16.msra.mxu1 %v2533_v48  ;;  %v2590_v48 = vld [vmem:[#allocation2 + $0x200] ss:$16 sps:$4 sm:$0xff]  }
  0x57   :  { %426 = vmatmul.mubr.bf16.gmra.mrb[16].mxu0 %v2978_v32  ;;  %1705 = vmatprep.subr.bf16.mxu1 %v2541_v50  ;;  %v3037_v31 = vrot.slane %v123_v29, %v127_v28 }
  0x58   :  { %2163 = vmatprep.mubr.msk.bf16.mxu0 %vm315_vm0, %v2980_v34  ;;  %1482 = vmatpush1.bf16.msra.mxu0 %v2542_v39 }
  0x59   :  { %1483 = vmatprep.subr.bf16.mxu0 %v2550_v43 }
  0x5a   :  { %1706 = vmatpush1.bf16.msra.mxu1 %v2539_v57 }
  0x5b   :  { %1707 = vmatprep.subr.bf16.mxu1 %v2547_v58 }
  0x5c   :  { %1484 = vmatpush1.bf16.msra.mxu0 %v2548_v45  ;;  %539 = vmatmul.mubr.bf16.gmra.mrb[16].mxu1 %v2978_v32  ;;  %v3041_v32 = vrot.slane %v123_v29, %v131_v30 }
  0x5d   :  { %1485 = vmatprep.subr.bf16.mxu0 %v2556_v46  ;;  %2172 = vmatprep.mubr.msk.bf16.mxu1 %vm315_vm0, %v2980_v34 }
  0x5e   :  { %1708 = vmatpush1.bf16.msra.mxu1 %v2545_v62  ;;  %v2599_v62 = vld [vmem:[#allocation2 + $0x228] ss:$16 sps:$4 sm:$0xff]  }
  0x5f   :  { %436 = vmatmul.mubr.bf16.gmra.mrb[20].mxu0 %v83_v47  ;;  %1709 = vmatprep.subr.bf16.mxu1 %v2553_v0 }
  0x60   :  { %2164 = vmatprep.mubr.msk.bf16.mxu0 %vm315_vm0, %v86_v49  ;;  %1486 = vmatpush1.bf16.msra.mxu0 %v2554_v51 }
  0x61   :  { %1487 = vmatprep.subr.bf16.mxu0 %v2562_v52  ;;  %v2598_v52 = vld [vmem:[#allocation2 + $0x224] ss:$16 sps:$4 sm:$0xff]  }
  0x62   :  { %1710 = vmatpush1.bf16.msra.mxu1 %v2551_v5  ;;  %v3055_v5 = vrot.slane %v123_v29, %v135_v56 }
  0x63   :  { %1711 = vmatprep.subr.bf16.mxu1 %v2559_v6 }
  0x64   :  { %1488 = vmatpush1.bf16.msra.mxu0 %v2560_v59  ;;  %549 = vmatmul.mubr.bf16.gmra.mrb[20].mxu1 %v83_v47  ;;  %v139_v59 = vsub.s32 3, %v3028_v27 }
  0x65   :  { %1489 = vmatprep.subr.bf16.mxu0 %v2568_v60  ;;  %2173 = vmatprep.mubr.msk.bf16.mxu1 %vm315_vm0, %v86_v49  ;;  %v2593_v49 = vld [vmem:[#allocation2 + $0x208] ss:$16 sps:$4 sm:$0xff]  }
  0x66   :  { %1712 = vmatpush1.bf16.msra.mxu1 %v2557_v9 }
  0x67   :  { %446 = vmatmul.mubr.bf16.gmra.mrb[24].mxu0 %v85_v61  ;;  %1713 = vmatprep.subr.bf16.mxu1 %v2565_v10  ;;  %v2602_v10 = vld [vmem:[#allocation2 + $0x240] ss:$16 sps:$4 sm:$0xff]  }
  0x68   :  { %2165 = vmatprep.mubr.msk.bf16.mxu0 %vm315_vm0, %v88_v63  ;;  %1490 = vmatpush1.bf16.msra.mxu0 %v2566_v1  ;;  %v2604_v1 = vld [vmem:[#allocation2 + $0x244] ss:$16 sps:$4 sm:$0xff]  }
  0x69   :  { %1491 = vmatprep.subr.bf16.mxu0 %v2574_v2  ;;  %v2607_v2 = vld [vmem:[#allocation2 + $0x24c] ss:$16 sps:$4 sm:$0xff]  }
  0x6a   :  { %1714 = vmatpush1.bf16.msra.mxu1 %v2563_v11  ;;  %v2605_v11 = vld [vmem:[#allocation2 + $0x248] ss:$16 sps:$4 sm:$0xff]  }
  0x6b   :  { %1715 = vmatprep.subr.bf16.mxu1 %v2571_v12 }
  0x6c   :  { %1492 = vmatpush1.bf16.msra.mxu0 %v2572_v7  ;;  %559 = vmatmul.mubr.bf16.gmra.mrb[24].mxu1 %v85_v61  ;;  %v2596_v61 = vld [vmem:[#allocation2 + $0x220] ss:$16 sps:$4 sm:$0xff]   ;;  %v3059_v7 = vrot.slane %v123_v29, %v139_v59  ;;  %v2611_v29 = vld [vmem:[#allocation2 + $0x268] ss:$16 sps:$4 sm:$0xff]  }
  0x6d   :  { %2174 = vmatprep.mubr.msk.bf16.mxu1 %vm315_vm0, %v88_v63  ;;  %1493 = vmatprep.subr.bf16.mxu0 %v2580_v16 }
  0x6e   :  { %1716 = vmatpush1.bf16.msra.mxu1 %v2569_v13 }
  0x6f   :  { %456 = vmatmul.mubr.bf16.gmra.mrb[28].mxu0 %v87_v8  ;;  %1717 = vmatprep.subr.bf16.mxu1 %v2577_v14  ;;  %v2610_v14 = vld [vmem:[#allocation2 + $0x264] ss:$16 sps:$4 sm:$0xff]  }
  0x70   :  { %1494 = vmatpush1.bf16.msra.mxu0 %v2578_v18 }
  0x71   :  { %1495 = vmatprep.subr.bf16.mxu0 %v2586_v20 }
  0x72   :  { %1718 = vmatpush1.bf16.msra.mxu1 %v2575_v15  ;;  %v2613_v15 = vld [vmem:[#allocation2 + $0x26c] ss:$16 sps:$4 sm:$0xff]  }
  0x73   :  { %1719 = vmatprep.subr.bf16.mxu1 %v2583_v17 }
  0x74   :  { %569 = vmatmul.mubr.bf16.gmra.mrb[28].mxu1 %v87_v8  ;;  %1496 = vmatpush1.bf16.msra.mxu0 %v2584_v22 }
  0x75   :  { %1578 = vmatprep.subr.bf16.mxu0 %v2592_v24 }
  0x76   :  { %1720 = vmatpush1.bf16.msra.mxu1 %v2581_v19 }
  0x77   :  { %1721 = vmatprep.subr.bf16.mxu1 %v2589_v21 }
  0x7a   :  { %1722 = vmatpush1.bf16.msra.mxu1 %v2587_v23  ;;  %v2608_v23 = vld [vmem:[#allocation2 + $0x260] ss:$16 sps:$4 sm:$0xff]  }
  0x7b   :  { %1804 = vmatprep.subr.bf16.mxu1 %v2595_v25 }
 0x10a   :  { %v387_v33 = vpop.f32.mrb[0].mxu0 }
 0x10b   :  { %v388_v34 = vadd.f32 %v387_v33, %v3037_v31  ;;  %v389_v35 = vpop.f32.mrb[1].mxu0  ;;  %v2616_v33 = vld [vmem:[#allocation2 + $0x284] ss:$16 sps:$4 sm:$0xff]  }
 0x10c   :  { %v390_v36 = vadd.f32 %v389_v35, %v3041_v32  ;;  %v391_v37 = vpop.f32.mrb[2].mxu0 }
 0x10d   :  { %v392_v38 = vadd.f32 %v391_v37, %v3037_v31  ;;  %v393_v39 = vpop.f32.mrb[3].mxu0  ;;  %v579_v41 = vmax.f32 %v388_v34, 0.0 }
 0x10e   :  { %v394_v40 = vadd.f32 %v393_v39, %v3041_v32  ;;  %v580_v43 = vmax.f32 %v390_v36, 0.0  ;;  %v2619_v39 = vld [vmem:[#allocation2 + $0x28c] ss:$16 sps:$4 sm:$0xff]  }
 0x10f   :  { %v583_v42 = vmax.f32 %v392_v38, 0.0  ;;  %v500_v16 = vpop.f32.mrb[0].mxu1 }
 0x110   :  { %v584_v44 = vmax.f32 %v394_v40, 0.0  ;;  %v501_v19 = vadd.f32 %v500_v16, %v3055_v5  ;;  %v502_v20 = vpop.f32.mrb[1].mxu1 }
 0x111   :  { %v643_v45 = vpack.c.bf16 %v583_v42, %v579_v41  ;;  %v503_v24 = vadd.f32 %v502_v20, %v3059_v7  ;;  %v504_v25 = vpop.f32.mrb[2].mxu1 }
 0x112   :  { %v644_v46 = vpack.c.bf16 %v584_v44, %v580_v43  ;;  %v397_v47 = vpop.f32.mrb[4].mxu0  ;;  %v581_v34 = vmax.f32 %v501_v19, 0.0  ;;  %v505_v35 = vadd.f32 %v504_v25, %v3055_v5  ;;  %v506_v36 = vpop.f32.mrb[3].mxu1  ;;  %v2626_v25 = vld [vmem:[#allocation2 + $0x2c0] ss:$16 sps:$4 sm:$0xff]  }
 0x113   :  { %v398_v50 = vadd.f32 %v397_v47, %v3037_v31  ;;  %v399_v51 = vpop.f32.mrb[5].mxu0  ;;  %v582_v40 = vmax.f32 %v503_v24, 0.0  ;;  %v507_v41 = vadd.f32 %v506_v36, %v3059_v7  ;;  %v2637_v36 = vld [vmem:[#allocation2 + $0x2ec] ss:$16 sps:$4 sm:$0xff]  }
 0x114   :  { %v400_v54 = vadd.f32 %v399_v51, %v3041_v32  ;;  %v401_v55 = vpop.f32.mrb[6].mxu0  ;;  %1497 = vmatprep.mubr.bf16.mxu0 %v644_v46  ;;  %1723 = vmatprep.mubr.bf16.mxu1 %v644_v46  ;;  %v585_v44 = vmax.f32 %v505_v35, 0.0  ;;  %v2634_v35 = vld [vmem:[#allocation2 + $0x2e4] ss:$16 sps:$4 sm:$0xff]  }
 0x115   :  { %v402_v57 = vadd.f32 %v401_v55, %v3037_v31  ;;  %v403_v58 = vpop.f32.mrb[7].mxu0  ;;  %1498 = vmatmul.mubr.bf16.vlgmr.msra.gmra.mrb[32].mxu0 %v643_v45  ;;  %1724 = vmatmul.mubr.bf16.vlgmr.msra.gmra.mrb[32].mxu1 %v643_v45  ;;  %v587_v63 = vmax.f32 %v398_v50, 0.0  ;;  %v586_v46 = vmax.f32 %v507_v41, 0.0  ;;  %v2617_v50 = vld [vmem:[#allocation2 + $0x288] ss:$16 sps:$4 sm:$0xff]  }
 0x116   :  { %v404_v60 = vadd.f32 %v403_v58, %v3041_v32  ;;  %1579 = vmatpush1.bf16.msra.mxu0 %v2590_v48  ;;  %1805 = vmatpush1.bf16.msra.mxu1 %v2593_v49  ;;  %v588_v3 = vmax.f32 %v400_v54, 0.0  ;;  %v2614_v49 = vld [vmem:[#allocation2 + $0x280] ss:$16 sps:$4 sm:$0xff]   ;;  %v3069_v51 = vpack.c.bf16 %v585_v44, %v581_v34  ;;  %v2622_v54 = vld [vmem:[#allocation2 + $0x2a4] ss:$16 sps:$4 sm:$0xff]  }
 0x117   :  { %v591_v0 = vmax.f32 %v402_v57, 0.0  ;;  %1580 = vmatprep.subr.bf16.mxu0 %v2598_v52  ;;  %1806 = vmatprep.subr.bf16.mxu1 %v2601_v53  ;;  %v2625_v55 = vld [vmem:[#allocation2 + $0x2ac] ss:$16 sps:$4 sm:$0xff]   ;;  %v3072_v57 = vpack.c.bf16 %v586_v46, %v582_v40  ;;  %v510_v58 = vpop.f32.mrb[4].mxu1 }
 0x118   :  { %v592_v4 = vmax.f32 %v404_v60, 0.0 }
 0x119   :  { %v647_v6 = vpack.c.bf16 %v591_v0, %v587_v63  ;;  %v512_v63 = vpop.f32.mrb[5].mxu1 }
 0x11a   :  { %v648_v8 = vpack.c.bf16 %v592_v4, %v588_v3  ;;  %v407_v9 = vpop.f32.mrb[8].mxu0  ;;  %1581 = vmatpush1.bf16.msra.mxu0 %v2596_v61  ;;  %1807 = vmatpush1.bf16.msra.mxu1 %v2599_v62  ;;  %v511_v62 = vadd.f32 %v510_v58, %v3055_v5  ;;  %v513_v3 = vadd.f32 %v512_v63, %v3059_v7  ;;  %v514_v4 = vpop.f32.mrb[6].mxu1 }
 0x11b   :  { %v408_v12 = vadd.f32 %v407_v9, %v3037_v31  ;;  %v409_v13 = vpop.f32.mrb[9].mxu0  ;;  %1582 = vmatprep.subr.bf16.mxu0 %v2604_v1  ;;  %1808 = vmatprep.subr.bf16.mxu1 %v2607_v2  ;;  %v2620_v2 = vld [vmem:[#allocation2 + $0x2a0] ss:$16 sps:$4 sm:$0xff]   ;;  %v2628_v9 = vld [vmem:[#allocation2 + $0x2c4] ss:$16 sps:$4 sm:$0xff]  }
 0x11c   :  { %v410_v17 = vadd.f32 %v409_v13, %v3041_v32  ;;  %v411_v18 = vpop.f32.mrb[10].mxu0  ;;  %1507 = vmatprep.mubr.bf16.mxu0 %v648_v8  ;;  %1733 = vmatprep.mubr.bf16.mxu1 %v648_v8  ;;  %v2623_v8 = vld [vmem:[#allocation2 + $0x2a8] ss:$16 sps:$4 sm:$0xff]   ;;  %v590_v16 = vmax.f32 %v513_v3, 0.0 }
 0x11d   :  { %v412_v21 = vadd.f32 %v411_v18, %v3037_v31  ;;  %v413_v22 = vpop.f32.mrb[11].mxu0  ;;  %1508 = vmatmul.mubr.bf16.gmra.mrb[36].mxu0 %v647_v6  ;;  %1734 = vmatmul.mubr.bf16.gmra.mrb[36].mxu1 %v647_v6  ;;  %v595_v37 = vmax.f32 %v408_v12, 0.0  ;;  %v516_v12 = vpop.f32.mrb[7].mxu1 }
 0x11e   :  { %v414_v26 = vadd.f32 %v413_v22, %v3041_v32  ;;  %1583 = vmatpush1.bf16.msra.mxu0 %v2602_v10  ;;  %1809 = vmatpush1.bf16.msra.mxu1 %v2605_v11  ;;  %v596_v42 = vmax.f32 %v410_v17, 0.0  ;;  %v589_v10 = vmax.f32 %v511_v62, 0.0  ;;  %v515_v11 = vadd.f32 %v514_v4, %v3055_v5 }
 0x11f   :  { %v599_v38 = vmax.f32 %v412_v21, 0.0  ;;  %1584 = vmatprep.subr.bf16.mxu0 %v2610_v14  ;;  %1810 = vmatprep.subr.bf16.mxu1 %v2613_v15  ;;  %v2631_v15 = vld [vmem:[#allocation2 + $0x2cc] ss:$16 sps:$4 sm:$0xff]   ;;  %v517_v17 = vadd.f32 %v516_v12, %v3059_v7 }
 0x120   :  { %v600_v43 = vmax.f32 %v414_v26, 0.0  ;;  %v593_v20 = vmax.f32 %v515_v11, 0.0  ;;  %v2629_v26 = vld [vmem:[#allocation2 + $0x2c8] ss:$16 sps:$4 sm:$0xff]  }
 0x121   :  { %v651_v45 = vpack.c.bf16 %v599_v38, %v595_v37  ;;  %v594_v22 = vmax.f32 %v517_v17, 0.0  ;;  %v520_v38 = vpop.f32.mrb[8].mxu1 }
 0x122   :  { %v652_v47 = vpack.c.bf16 %v600_v43, %v596_v42  ;;  %v417_v48 = vpop.f32.mrb[12].mxu0  ;;  %1585 = vmatpush1.bf16.msra.mxu0 %v2608_v23  ;;  %1811 = vmatpush1.bf16.msra.mxu1 %v2611_v29  ;;  %v3081_v29 = vpack.c.bf16 %v593_v20, %v589_v10  ;;  %v521_v41 = vadd.f32 %v520_v38, %v3055_v5  ;;  %v522_v42 = vpop.f32.mrb[9].mxu1 }
 0x123   :  { %v418_v52 = vadd.f32 %v417_v48, %v3037_v31  ;;  %v419_v53 = vpop.f32.mrb[13].mxu0  ;;  %1586 = vmatprep.subr.bf16.mxu0 %v2616_v33  ;;  %1812 = vmatprep.subr.bf16.mxu1 %v2619_v39  ;;  %v3084_v37 = vpack.c.bf16 %v594_v22, %v590_v16  ;;  %v523_v46 = vadd.f32 %v522_v42, %v3059_v7 }
 0x124   :  { %v420_v60 = vadd.f32 %v419_v53, %v3041_v32  ;;  %v421_v61 = vpop.f32.mrb[14].mxu0  ;;  %1517 = vmatprep.mubr.bf16.mxu0 %v652_v47  ;;  %1743 = vmatprep.mubr.bf16.mxu1 %v652_v47  ;;  %v524_v47 = vpop.f32.mrb[10].mxu1 }
 0x125   :  { %v422_v0 = vadd.f32 %v421_v61, %v3037_v31  ;;  %v423_v1 = vpop.f32.mrb[15].mxu0  ;;  %1518 = vmatmul.mubr.bf16.gmra.mrb[40].mxu0 %v651_v45  ;;  %1744 = vmatmul.mubr.bf16.gmra.mrb[40].mxu1 %v651_v45  ;;  %v603_v13 = vmax.f32 %v418_v52, 0.0  ;;  %v2632_v45 = vld [vmem:[#allocation2 + $0x2e0] ss:$16 sps:$4 sm:$0xff]   ;;  %v597_v52 = vmax.f32 %v521_v41, 0.0  ;;  %v525_v53 = vadd.f32 %v524_v47, %v3055_v5 }
 0x126   :  { %v424_v6 = vadd.f32 %v423_v1, %v3041_v32  ;;  %1587 = vmatpush1.bf16.msra.mxu0 %v2614_v49  ;;  %1813 = vmatpush1.bf16.msra.mxu1 %v2617_v50  ;;  %v604_v18 = vmax.f32 %v420_v60, 0.0  ;;  %v2635_v49 = vld [vmem:[#allocation2 + $0x2e8] ss:$16 sps:$4 sm:$0xff]   ;;  %v2640_v50 = vld [vmem:[#allocation2 + $0x304] ss:$16 sps:$4 sm:$0xff]   ;;  %v598_v61 = vmax.f32 %v523_v46, 0.0 }
 0x127   :  { %v607_v14 = vmax.f32 %v422_v0, 0.0  ;;  %1588 = vmatprep.subr.bf16.mxu0 %v2622_v54  ;;  %1814 = vmatprep.subr.bf16.mxu1 %v2625_v55  ;;  %v526_v54 = vpop.f32.mrb[11].mxu1  ;;  %v2643_v60 = vld [vmem:[#allocation2 + $0x30c] ss:$16 sps:$4 sm:$0xff]   ;;  %v601_v1 = vmax.f32 %v525_v53, 0.0 }
 0x128   :  { %v608_v19 = vmax.f32 %v424_v6, 0.0  ;;  %v527_v62 = vadd.f32 %v526_v54, %v3059_v7  ;;  %v530_v16 = vpop.f32.mrb[12].mxu1  ;;  %v2655_v41 = vld [vmem:[#allocation2 + $0x34c] ss:$16 sps:$4 sm:$0xff]   ;;  %v2653_v53 = vld [vmem:[#allocation2 + $0x348] ss:$16 sps:$4 sm:$0xff]  }
 0x129   :  { %v655_v21 = vpack.c.bf16 %v607_v14, %v603_v13  ;;  %v3093_v10 = vpack.c.bf16 %v601_v1, %v597_v52  ;;  %v2646_v13 = vld [vmem:[#allocation2 + $0x324] ss:$16 sps:$4 sm:$0xff]   ;;  %v2649_v14 = vld [vmem:[#allocation2 + $0x32c] ss:$16 sps:$4 sm:$0xff]   ;;  %v532_v20 = vpop.f32.mrb[13].mxu1 }
 0x12a   :  { %v656_v23 = vpack.c.bf16 %v608_v19, %v604_v18  ;;  %v427_v24 = vpop.f32.mrb[16].mxu0  ;;  %1589 = vmatpush1.bf16.msra.mxu0 %v2620_v2  ;;  %1815 = vmatpush1.bf16.msra.mxu1 %v2623_v8  ;;  %v602_v3 = vmax.f32 %v527_v62, 0.0  ;;  %v2638_v8 = vld [vmem:[#allocation2 + $0x300] ss:$16 sps:$4 sm:$0xff]   ;;  %v531_v19 = vadd.f32 %v530_v16, %v3055_v5 }
 0x12b   :  { %v428_v33 = vadd.f32 %v427_v24, %v3037_v31  ;;  %v429_v34 = vpop.f32.mrb[17].mxu0  ;;  %1590 = vmatprep.subr.bf16.mxu0 %v2628_v9  ;;  %1816 = vmatprep.subr.bf16.mxu1 %v2631_v15  ;;  %v2641_v9 = vld [vmem:[#allocation2 + $0x308] ss:$16 sps:$4 sm:$0xff]   ;;  %v533_v24 = vadd.f32 %v532_v20, %v3059_v7  ;;  %v2650_v52 = vld [vmem:[#allocation2 + $0x340] ss:$16 sps:$4 sm:$0xff]  }
 0x12c   :  { %v430_v39 = vadd.f32 %v429_v34, %v3041_v32  ;;  %v431_v40 = vpop.f32.mrb[18].mxu0  ;;  %1527 = vmatprep.mubr.bf16.mxu0 %v656_v23  ;;  %1753 = vmatprep.mubr.bf16.mxu1 %v656_v23  ;;  %v3096_v15 = vpack.c.bf16 %v602_v3, %v598_v61  ;;  %v2644_v23 = vld [vmem:[#allocation2 + $0x320] ss:$16 sps:$4 sm:$0xff]   ;;  %v2652_v34 = vld [vmem:[#allocation2 + $0x344] ss:$16 sps:$4 sm:$0xff]  }
 0x12d   :  { %v432_v43 = vadd.f32 %v431_v40, %v3037_v31  ;;  %v433_v44 = vpop.f32.mrb[19].mxu0  ;;  %1528 = vmatmul.mubr.bf16.gmra.mrb[44].mxu0 %v655_v21  ;;  %1754 = vmatmul.mubr.bf16.gmra.mrb[44].mxu1 %v655_v21  ;;  %v611_v55 = vmax.f32 %v428_v33, 0.0  ;;  %v2647_v33 = vld [vmem:[#allocation2 + $0x328] ss:$16 sps:$4 sm:$0xff]   ;;  %v606_v42 = vmax.f32 %v533_v24, 0.0 }
 0x12e   :  { %v434_v48 = vadd.f32 %v433_v44, %v3041_v32  ;;  %1591 = vmatpush1.bf16.msra.mxu0 %v2626_v25  ;;  %1817 = vmatpush1.bf16.msra.mxu1 %v2629_v26  ;;  %v612_v63 = vmax.f32 %v430_v39, 0.0  ;;  %v534_v25 = vpop.f32.mrb[14].mxu1  ;;  %v2661_v61 = vld [vmem:[#allocation2 + $0x36c] ss:$16 sps:$4 sm:$0xff]  }
 0x12f   :  { %v615_v58 = vmax.f32 %v432_v43, 0.0  ;;  %1592 = vmatprep.subr.bf16.mxu0 %v2634_v35  ;;  %1818 = vmatprep.subr.bf16.mxu1 %v2637_v36  ;;  %v605_v35 = vmax.f32 %v531_v19, 0.0  ;;  %v535_v36 = vadd.f32 %v534_v25, %v3055_v5  ;;  %v536_v38 = vpop.f32.mrb[15].mxu1 }
 0x130   :  { %v616_v0 = vmax.f32 %v434_v48, 0.0  ;;  %v537_v43 = vadd.f32 %v536_v38, %v3059_v7  ;;  %v2662_v38 = vld [vmem:[#allocation2 + $0x380] ss:$16 sps:$4 sm:$0xff]  }
 0x131   :  { %v659_v2 = vpack.c.bf16 %v615_v58, %v611_v55  ;;  %v609_v46 = vmax.f32 %v535_v36, 0.0 }
 0x132   :  { %v660_v4 = vpack.c.bf16 %v616_v0, %v612_v63  ;;  %v437_v6 = vpop.f32.mrb[20].mxu0  ;;  %1593 = vmatpush1.bf16.msra.mxu0 %v2632_v45  ;;  %1819 = vmatpush1.bf16.msra.mxu1 %v2635_v49  ;;  %v610_v48 = vmax.f32 %v537_v43, 0.0  ;;  %v540_v63 = vpop.f32.mrb[16].mxu1  ;;  %v2670_v43 = vld [vmem:[#allocation2 + $0x3a4] ss:$16 sps:$4 sm:$0xff]  }
 0x133   :  { %v438_v11 = vadd.f32 %v437_v6, %v3037_v31  ;;  %v439_v12 = vpop.f32.mrb[21].mxu0  ;;  %1594 = vmatprep.subr.bf16.mxu0 %v2640_v50  ;;  %1820 = vmatprep.subr.bf16.mxu1 %v2643_v60  ;;  %v3105_v54 = vpack.c.bf16 %v609_v46, %v605_v35  ;;  %v2658_v60 = vld [vmem:[#allocation2 + $0x364] ss:$16 sps:$4 sm:$0xff]   ;;  %v542_v3 = vpop.f32.mrb[17].mxu1 }
 0x134   :  { %v440_v17 = vadd.f32 %v439_v12, %v3041_v32  ;;  %v441_v18 = vpop.f32.mrb[22].mxu0  ;;  %1537 = vmatprep.mubr.bf16.mxu0 %v660_v4  ;;  %1763 = vmatprep.mubr.bf16.mxu1 %v660_v4  ;;  %v3108_v62 = vpack.c.bf16 %v610_v48, %v606_v42 }
 0x135   :  { %v442_v21 = vadd.f32 %v441_v18, %v3037_v31  ;;  %v443_v22 = vpop.f32.mrb[23].mxu0  ;;  %1538 = vmatmul.mubr.bf16.gmra.mrb[48].mxu0 %v659_v2  ;;  %1764 = vmatmul.mubr.bf16.gmra.mrb[48].mxu1 %v659_v2  ;;  %v619_v39 = vmax.f32 %v438_v11, 0.0  ;;  %v541_v2 = vadd.f32 %v540_v63, %v3055_v5  ;;  %v544_v11 = vpop.f32.mrb[18].mxu1  ;;  %v2671_v63 = vld [vmem:[#allocation2 + $0x3a8] ss:$16 sps:$4 sm:$0xff]  }
 0x136   :  { %v444_v26 = vadd.f32 %v443_v22, %v3041_v32  ;;  %1595 = vmatpush1.bf16.msra.mxu0 %v2638_v8  ;;  %1821 = vmatpush1.bf16.msra.mxu1 %v2641_v9  ;;  %v620_v44 = vmax.f32 %v440_v17, 0.0  ;;  %v2656_v8 = vld [vmem:[#allocation2 + $0x360] ss:$16 sps:$4 sm:$0xff]   ;;  %v543_v9 = vadd.f32 %v542_v3, %v3059_v7  ;;  %v545_v17 = vadd.f32 %v544_v11, %v3055_v5  ;;  %v546_v18 = vpop.f32.mrb[19].mxu1 }
 0x137   :  { %v623_v40 = vmax.f32 %v442_v21, 0.0  ;;  %1596 = vmatprep.subr.bf16.mxu0 %v2646_v13  ;;  %1822 = vmatprep.subr.bf16.mxu1 %v2649_v14  ;;  %v2659_v13 = vld [vmem:[#allocation2 + $0x368] ss:$16 sps:$4 sm:$0xff]   ;;  %v2664_v14 = vld [vmem:[#allocation2 + $0x384] ss:$16 sps:$4 sm:$0xff]   ;;  %v613_v16 = vmax.f32 %v541_v2, 0.0 }
 0x138   :  { %v624_v45 = vmax.f32 %v444_v26, 0.0  ;;  %v2667_v21 = vld [vmem:[#allocation2 + $0x38c] ss:$16 sps:$4 sm:$0xff]   ;;  %v614_v22 = vmax.f32 %v543_v9, 0.0  ;;  %v617_v26 = vmax.f32 %v545_v17, 0.0  ;;  %v550_v46 = vpop.f32.mrb[20].mxu1 }
 0x139   :  { %v663_v47 = vpack.c.bf16 %v623_v40, %v619_v39  ;;  %v2665_v39 = vld [vmem:[#allocation2 + $0x388] ss:$16 sps:$4 sm:$0xff]   ;;  %v2674_v17 = vld [vmem:[#allocation2 + $0x3c0] ss:$16 sps:$4 sm:$0xff]  }
 0x13a   :  { %v664_v49 = vpack.c.bf16 %v624_v45, %v620_v44  ;;  %v447_v50 = vpop.f32.mrb[24].mxu0  ;;  %1597 = vmatpush1.bf16.msra.mxu0 %v2644_v23  ;;  %1823 = vmatpush1.bf16.msra.mxu1 %v2647_v33  ;;  %v547_v23 = vadd.f32 %v546_v18, %v3059_v7  ;;  %v3117_v40 = vpack.c.bf16 %v617_v26, %v613_v16  ;;  %v2673_v44 = vld [vmem:[#allocation2 + $0x3ac] ss:$16 sps:$4 sm:$0xff]   ;;  %v2677_v18 = vld [vmem:[#allocation2 + $0x3c8] ss:$16 sps:$4 sm:$0xff]  }
 0x13b   :  { %v448_v55 = vadd.f32 %v447_v50, %v3037_v31  ;;  %v449_v58 = vpop.f32.mrb[25].mxu0  ;;  %1598 = vmatprep.subr.bf16.mxu0 %v2652_v34  ;;  %1824 = vmatprep.subr.bf16.mxu1 %v2655_v41  ;;  %v552_v50 = vpop.f32.mrb[21].mxu1 }
 0x13c   :  { %v450_v0 = vadd.f32 %v449_v58, %v3041_v32  ;;  %v451_v1 = vpop.f32.mrb[26].mxu0  ;;  %1547 = vmatprep.mubr.bf16.mxu0 %v664_v49  ;;  %1773 = vmatprep.mubr.bf16.mxu1 %v664_v49  ;;  %v618_v34 = vmax.f32 %v547_v23, 0.0  ;;  %v551_v49 = vadd.f32 %v550_v46, %v3055_v5  ;;  %v553_v58 = vadd.f32 %v552_v50, %v3059_v7  ;;  %v2685_v23 = vld [vmem:[#allocation2 + $0x3ec] ss:$16 sps:$4 sm:$0xff]  }
 0x13d   :  { %v452_v4 = vadd.f32 %v451_v1, %v3037_v31  ;;  %v453_v6 = vpop.f32.mrb[27].mxu0  ;;  %1548 = vmatmul.mubr.bf16.gmra.mrb[52].mxu0 %v663_v47  ;;  %1774 = vmatmul.mubr.bf16.gmra.mrb[52].mxu1 %v663_v47  ;;  %v627_v19 = vmax.f32 %v448_v55, 0.0  ;;  %v2668_v55 = vld [vmem:[#allocation2 + $0x3a0] ss:$16 sps:$4 sm:$0xff]  }
 0x13e   :  { %v454_v12 = vadd.f32 %v453_v6, %v3041_v32  ;;  %1599 = vmatpush1.bf16.msra.mxu0 %v2650_v52  ;;  %1825 = vmatpush1.bf16.msra.mxu1 %v2653_v53  ;;  %v628_v24 = vmax.f32 %v450_v0, 0.0  ;;  %v3120_v45 = vpack.c.bf16 %v618_v34, %v614_v22  ;;  %v2676_v0 = vld [vmem:[#allocation2 + $0x3c4] ss:$16 sps:$4 sm:$0xff]   ;;  %v621_v1 = vmax.f32 %v551_v49, 0.0  ;;  %v2680_v34 = vld [vmem:[#allocation2 + $0x3e0] ss:$16 sps:$4 sm:$0xff]  }
 0x13f   :  { %v631_v20 = vmax.f32 %v452_v4, 0.0  ;;  %1600 = vmatprep.subr.bf16.mxu0 %v2658_v60  ;;  %1826 = vmatprep.subr.bf16.mxu1 %v2661_v61  ;;  %v554_v60 = vpop.f32.mrb[22].mxu1 }
 0x140   :  { %v632_v25 = vmax.f32 %v454_v12, 0.0  ;;  %v555_v2 = vadd.f32 %v554_v60, %v3055_v5  ;;  %v556_v3 = vpop.f32.mrb[23].mxu1 }
 0x141   :  { %v667_v33 = vpack.c.bf16 %v631_v20, %v627_v19  ;;  %v557_v9 = vadd.f32 %v556_v3, %v3059_v7  ;;  %v2682_v20 = vld [vmem:[#allocation2 + $0x3e4] ss:$16 sps:$4 sm:$0xff]   ;;  %v560_v22 = vpop.f32.mrb[24].mxu1 }
 0x142   :  { %v668_v35 = vpack.c.bf16 %v632_v25, %v628_v24  ;;  %v457_v36 = vpop.f32.mrb[28].mxu0  ;;  %1601 = vmatpush1.bf16.msra.mxu0 %v2656_v8  ;;  %1827 = vmatpush1.bf16.msra.mxu1 %v2659_v13  ;;  %v622_v8 = vmax.f32 %v553_v58, 0.0  ;;  %v625_v13 = vmax.f32 %v555_v2, 0.0  ;;  %v561_v24 = vadd.f32 %v560_v22, %v3055_v5  ;;  %v562_v25 = vpop.f32.mrb[25].mxu1 }
 0x143   :  { %v458_v41 = vadd.f32 %v457_v36, %v3037_v31  ;;  %v459_v42 = vpop.f32.mrb[29].mxu0  ;;  %1602 = vmatprep.subr.bf16.mxu0 %v2664_v14  ;;  %1828 = vmatprep.subr.bf16.mxu1 %v2667_v21  ;;  %v626_v14 = vmax.f32 %v557_v9, 0.0  ;;  %v563_v26 = vadd.f32 %v562_v25, %v3059_v7 }
 0x144   :  { %v460_v47 = vadd.f32 %v459_v42, %v3041_v32  ;;  %v461_v48 = vpop.f32.mrb[30].mxu0  ;;  %1557 = vmatprep.mubr.bf16.mxu0 %v668_v35  ;;  %1783 = vmatprep.mubr.bf16.mxu1 %v668_v35  ;;  %v3129_v19 = vpack.c.bf16 %v625_v13, %v621_v1  ;;  %v2683_v35 = vld [vmem:[#allocation2 + $0x3e8] ss:$16 sps:$4 sm:$0xff]   ;;  %v629_v36 = vmax.f32 %v561_v24, 0.0 }
 0x145   :  { %v462_v52 = vadd.f32 %v461_v48, %v3037_v31  ;;  %v463_v53 = vpop.f32.mrb[31].mxu0  ;;  %1558 = vmatmul.mubr.bf16.gmra.mrb[56].mxu0 %v667_v33  ;;  %1784 = vmatmul.mubr.bf16.gmra.mrb[56].mxu1 %v667_v33  ;;  %v635_v4 = vmax.f32 %v458_v41, 0.0  ;;  %v2679_v31 = vld [vmem:[#allocation2 + $0x3cc] ss:$16 sps:$4 sm:$0xff]   ;;  %v666_v21 = vpack.c.bf16 %v626_v14, %v622_v8  ;;  %v564_v33 = vpop.f32.mrb[26].mxu1  ;;  %v630_v41 = vmax.f32 %v563_v26, 0.0 }
 0x146   :  { %v464_v61 = vadd.f32 %v463_v53, %v3041_v32  ;;  %1603 = vmatpush1.bf16.msra.mxu0 %v2662_v38  ;;  %1829 = vmatpush1.bf16.msra.mxu1 %v2665_v39  ;;  %v636_v11 = vmax.f32 %v460_v47, 0.0  ;;  %v565_v38 = vadd.f32 %v564_v33, %v3055_v5  ;;  %v566_v39 = vpop.f32.mrb[27].mxu1 }
 0x147   :  { %v639_v6 = vmax.f32 %v462_v52, 0.0  ;;  %1604 = vmatprep.subr.bf16.mxu0 %v2670_v43  ;;  %1830 = vmatprep.subr.bf16.mxu1 %v2673_v44  ;;  %v567_v42 = vadd.f32 %v566_v39, %v3059_v7  ;;  %v570_v48 = vpop.f32.mrb[28].mxu1 }
 0x148   :  { %v640_v12 = vmax.f32 %v464_v61, 0.0  ;;  %v633_v43 = vmax.f32 %v565_v38, 0.0  ;;  %v571_v49 = vadd.f32 %v570_v48, %v3055_v5  ;;  %v572_v50 = vpop.f32.mrb[29].mxu1 }
 0x149   :  { %v671_v32 = vpack.c.bf16 %v639_v6, %v635_v4  ;;  %v634_v44 = vmax.f32 %v567_v42, 0.0  ;;  %v573_v52 = vadd.f32 %v572_v50, %v3059_v7  ;;  %v574_v53 = vpop.f32.mrb[30].mxu1 }
 0x14a   :  { %v672_v16 = vpack.c.bf16 %v640_v12, %v636_v11  ;;  %1605 = vmatpush1.bf16.msra.mxu0 %v2668_v55  ;;  %1831 = vmatpush1.bf16.msra.mxu1 %v2671_v63  ;;  %v669_v46 = vpack.c.bf16 %v633_v43, %v629_v36  ;;  %v575_v55 = vadd.f32 %v574_v53, %v3055_v5  ;;  %v576_v58 = vpop.f32.mrb[31].mxu1  ;;  %v3164_v5 = vld [vmem:[%s3273_s5] sm:$0xff] }
 0x14b   :  { %1606 = vmatprep.subr.bf16.mxu0 %v2676_v0  ;;  %1832 = vmatprep.subr.bf16.mxu1 %v2679_v31  ;;  %v670_v47 = vpack.c.bf16 %v634_v44, %v630_v41  ;;  %v638_v60 = vmax.f32 %v573_v52, 0.0  ;;  %v577_v61 = vadd.f32 %v576_v58, %v3059_v7  ;;  %v3169_v7 = vld [vmem:[%s3273_s5 + $0x8] sm:$0xff] }
 0x14c   :  { %1567 = vmatprep.mubr.bf16.mxu0 %v672_v16  ;;  %1793 = vmatprep.mubr.bf16.mxu1 %v672_v16  ;;  %v641_v63 = vmax.f32 %v575_v55, 0.0 }
 0x14d   :  { %1568 = vmatmul.mubr.bf16.gmra.mrb[60].mxu0 %v671_v32  ;;  %1794 = vmatmul.mubr.bf16.gmra.mrb[60].mxu1 %v671_v32  ;;  %v642_v0 = vmax.f32 %v577_v61, 0.0 }
 0x14e   :  { %1607 = vmatpush1.bf16.msra.mxu0 %v2674_v17  ;;  %1833 = vmatpush1.bf16.msra.mxu1 %v2677_v18 }
 0x14f   :  { %1608 = vmatprep.subr.bf16.mxu0 %v2682_v20  ;;  %1610 = vmatprep.mubr.bf16.mxu0 %v3072_v57  ;;  %v674_v2 = vpack.c.bf16 %v642_v0, %v638_v60 }
 0x150   :  { %1834 = vmatprep.subr.bf16.mxu1 %v2685_v23  ;;  %1836 = vmatprep.mubr.bf16.mxu1 %v3072_v57  ;;  %v637_v57 = vmax.f32 %v571_v49, 0.0 }
 0x152   :  { %1609 = vmatpush1.bf16.msra.mxu0 %v2680_v34  ;;  %1835 = vmatpush1.bf16.msra.mxu1 %v2683_v35  ;;  %v673_v1 = vpack.c.bf16 %v641_v63, %v637_v57 }
 0x155   :  { %1611 = vmatmul.mubr.bf16.vlgmr.msra.gmra.mrb[32].mxu0 %v3069_v51  ;;  %1837 = vmatmul.mubr.bf16.vlgmr.msra.gmra.mrb[32].mxu1 %v3069_v51  ;;  %v2304_v51 = vcombine.high %v3164_v5, %v3164_v5 }
 0x156   :  { %1620 = vmatprep.mubr.bf16.mxu0 %v3084_v37  ;;  %1846 = vmatprep.mubr.bf16.mxu1 %v3084_v37  ;;  %v2015_v37 = vld [vmem:[%s3274_s6] sm:$0xff] }
 0x15d   :  { %1621 = vmatmul.mubr.bf16.gmra.mrb[36].mxu0 %v3081_v29  ;;  %1847 = vmatmul.mubr.bf16.gmra.mrb[36].mxu1 %v3081_v29  ;;  %v2306_v29 = vcombine.high %v3169_v7, %v3169_v7 }
 0x15e   :  { %1630 = vmatprep.mubr.bf16.mxu0 %v3096_v15  ;;  %1856 = vmatprep.mubr.bf16.mxu1 %v3096_v15  ;;  %v803_v15 = vld [vmem:[%s3272_s4] sm:$0xf] }
 0x165   :  { %1631 = vmatmul.mubr.bf16.gmra.mrb[40].mxu0 %v3093_v10  ;;  %1857 = vmatmul.mubr.bf16.gmra.mrb[40].mxu1 %v3093_v10  ;;  %v2717_v10 = vmov 0  }
 0x166   :  { %1640 = vmatprep.mubr.bf16.mxu0 %v3108_v62  ;;  %1866 = vmatprep.mubr.bf16.mxu1 %v3108_v62  ;;  %v3187_v62 = vrot.slane %v803_v15, %v135_v56 }
 0x167   :  { %2441 = vset.pattern.permute.xlu0 %v2717_v10 }
 0x168   :  { %2018 = vperm.xlu0 %2441, %v2015_v37  }
 0x16d   :  { %1641 = vmatmul.mubr.bf16.gmra.mrb[44].mxu0 %v3105_v54  ;;  %1867 = vmatmul.mubr.bf16.gmra.mrb[44].mxu1 %v3105_v54  ;;  %v3183_v54 = vrot.slane %v803_v15, %v127_v28 }
 0x16e   :  { %1650 = vmatprep.mubr.bf16.mxu0 %v3120_v45  ;;  %1876 = vmatprep.mubr.bf16.mxu1 %v3120_v45  ;;  %v3195_v45 = vrot.slane %v803_v15, %v139_v59 }
 0x175   :  { %1651 = vmatmul.mubr.bf16.gmra.mrb[48].mxu0 %v3117_v40  ;;  %1877 = vmatmul.mubr.bf16.gmra.mrb[48].mxu1 %v3117_v40  ;;  %v3191_v40 = vrot.slane %v803_v15, %v131_v30 }
 0x176   :  { %1660 = vmatprep.mubr.bf16.mxu0 %v666_v21  ;;  %1886 = vmatprep.mubr.bf16.mxu1 %v666_v21 }
 0x17d   :  { %1661 = vmatmul.mubr.bf16.gmra.mrb[52].mxu0 %v3129_v19  ;;  %1887 = vmatmul.mubr.bf16.gmra.mrb[52].mxu1 %v3129_v19 }
 0x17e   :  { %1670 = vmatprep.mubr.bf16.mxu0 %v670_v47  ;;  %1896 = vmatprep.mubr.bf16.mxu1 %v670_v47 }
 0x185   :  { %1671 = vmatmul.mubr.bf16.gmra.mrb[56].mxu0 %v669_v46  ;;  %1897 = vmatmul.mubr.bf16.gmra.mrb[56].mxu1 %v669_v46 }
 0x186   :  { %1680 = vmatprep.mubr.bf16.mxu0 %v674_v2  ;;  %1906 = vmatprep.mubr.bf16.mxu1 %v674_v2 }
 0x18d   :  { %1681 = vmatmul.mubr.bf16.gmra.mrb[60].mxu0 %v673_v1  ;;  %1907 = vmatmul.mubr.bf16.gmra.mrb[60].mxu1 %v673_v1 }
 0x18e   :  { %2067 = vmatprep.mubr.bf16.mxu1 %v2304_v51  ;;  %2107 = vmatprep.mubr.bf16.mxu0 %v2306_v29 }
 0x228   :  { %v1612_v3 = vpop.f32.mrb[32].mxu0  ;;  %v1838_v4 = vpop.f32.mrb[32].mxu1 }
 0x229   :  { %v2307_v6 = vadd.f32 %v1612_v3, %v3183_v54  ;;  %v2339_v31 = vadd.f32 %v1838_v4, %v3187_v62  ;;  %v1614_v28 = vpop.f32.mrb[33].mxu0  ;;  %v1840_v8 = vpop.f32.mrb[33].mxu1 }
 0x22a   :  { %v2308_v9 = vadd.f32 %v1614_v28, %v3191_v40  ;;  %v2340_v56 = vadd.f32 %v1840_v8, %v3195_v45  ;;  %v1616_v11 = vpop.f32.mrb[34].mxu0  ;;  %v1842_v12 = vpop.f32.mrb[34].mxu1 }
 0x22b   :  { %v2309_v30 = vadd.f32 %v1616_v11, %v3183_v54  ;;  %v2341_v27 = vadd.f32 %v1842_v12, %v3187_v62  ;;  %v1618_v59 = vpop.f32.mrb[35].mxu0  ;;  %v1844_v13 = vpop.f32.mrb[35].mxu1  ;;  %v1917_v16 = vmax.f32 %v2307_v6, 0.0  ;;  %v1919_v17 = vmax.f32 %v2339_v31, 0.0 }
 0x22c   :  { %v2310_v32 = vadd.f32 %v1618_v59, %v3191_v40  ;;  %v2342_v14 = vadd.f32 %v1844_v13, %v3195_v45  ;;  %v1918_v20 = vmax.f32 %v2308_v9, 0.0  ;;  %v1920_v21 = vmax.f32 %v2340_v56, 0.0 }
 0x22d   :  { %v1921_v18 = vmax.f32 %v2309_v30, 0.0  ;;  %v1923_v19 = vmax.f32 %v2341_v27, 0.0 }
 0x22e   :  { %v1922_v22 = vmax.f32 %v2310_v32, 0.0  ;;  %v1924_v23 = vmax.f32 %v2342_v14, 0.0 }
 0x22f   :  { %v1981_v24 = vpack.c.bf16 %v1921_v18, %v1917_v16  ;;  %v1983_v25 = vpack.c.bf16 %v1923_v19, %v1919_v17 }
 0x230   :  { %v1982_v26 = vpack.c.bf16 %v1922_v22, %v1918_v20  ;;  %v1984_v33 = vpack.c.bf16 %v1924_v23, %v1920_v21  ;;  %v1622_v34 = vpop.f32.mrb[36].mxu0  ;;  %v1848_v35 = vpop.f32.mrb[36].mxu1 }
 0x231   :  { %v2311_v36 = vadd.f32 %v1622_v34, %v3183_v54  ;;  %v2343_v38 = vadd.f32 %v1848_v35, %v3187_v62  ;;  %v1624_v39 = vpop.f32.mrb[37].mxu0  ;;  %v1850_v41 = vpop.f32.mrb[37].mxu1 }
 0x232   :  { %v2312_v42 = vadd.f32 %v1624_v39, %v3191_v40  ;;  %v2344_v43 = vadd.f32 %v1850_v41, %v3195_v45  ;;  %v1626_v44 = vpop.f32.mrb[38].mxu0  ;;  %v1852_v46 = vpop.f32.mrb[38].mxu1  ;;  %2035 = vmatprep.subr.bf16.mxu1 %v1982_v26  ;;  %2075 = vmatprep.subr.bf16.mxu0 %v1984_v33 }
 0x233   :  { %v2313_v47 = vadd.f32 %v1626_v44, %v3183_v54  ;;  %v2345_v48 = vadd.f32 %v1852_v46, %v3187_v62  ;;  %v1628_v49 = vpop.f32.mrb[39].mxu0  ;;  %v1854_v50 = vpop.f32.mrb[39].mxu1  ;;  %2036 = vmatpush1.bf16.xpose.msra.mxu1 %v1981_v24  ;;  %2076 = vmatpush1.bf16.xpose.msra.mxu0 %v1983_v25  ;;  %v1925_v57 = vmax.f32 %v2311_v36, 0.0  ;;  %v1927_v55 = vmax.f32 %v2343_v38, 0.0 }
 0x234   :  { %v2314_v52 = vadd.f32 %v1628_v49, %v3191_v40  ;;  %v2346_v53 = vadd.f32 %v1854_v50, %v3195_v45  ;;  %v1926_v61 = vmax.f32 %v2312_v42, 0.0  ;;  %v1928_v63 = vmax.f32 %v2344_v43, 0.0 }
 0x235   :  { %v1929_v58 = vmax.f32 %v2313_v47, 0.0  ;;  %v1931_v60 = vmax.f32 %v2345_v48, 0.0 }
 0x236   :  { %v1930_v0 = vmax.f32 %v2314_v52, 0.0  ;;  %v1932_v1 = vmax.f32 %v2346_v53, 0.0 }
 0x237   :  { %v1985_v2 = vpack.c.bf16 %v1929_v58, %v1925_v57  ;;  %v1987_v51 = vpack.c.bf16 %v1931_v60, %v1927_v55 }
 0x238   :  { %v1986_v29 = vpack.c.bf16 %v1930_v0, %v1926_v61  ;;  %v1988_v37 = vpack.c.bf16 %v1932_v1, %v1928_v63  ;;  %v1632_v10 = vpop.f32.mrb[40].mxu0  ;;  %v1858_v15 = vpop.f32.mrb[40].mxu1 }
 0x239   :  { %v2315_v3 = vadd.f32 %v1632_v10, %v3183_v54  ;;  %v2347_v4 = vadd.f32 %v1858_v15, %v3187_v62  ;;  %v1634_v6 = vpop.f32.mrb[41].mxu0  ;;  %v1860_v31 = vpop.f32.mrb[41].mxu1 }
 0x23a   :  { %v2316_v28 = vadd.f32 %v1634_v6, %v3191_v40  ;;  %v2348_v8 = vadd.f32 %v1860_v31, %v3195_v45  ;;  %v1636_v9 = vpop.f32.mrb[42].mxu0  ;;  %v1862_v56 = vpop.f32.mrb[42].mxu1  ;;  %2037 = vmatprep.subr.bf16.mxu1 %v1986_v29  ;;  %2077 = vmatprep.subr.bf16.mxu0 %v1988_v37 }
 0x23b   :  { %v2317_v11 = vadd.f32 %v1636_v9, %v3183_v54  ;;  %v2349_v12 = vadd.f32 %v1862_v56, %v3187_v62  ;;  %v1638_v30 = vpop.f32.mrb[43].mxu0  ;;  %v1864_v27 = vpop.f32.mrb[43].mxu1  ;;  %2038 = vmatpush1.bf16.xpose.msra.mxu1 %v1985_v2  ;;  %2078 = vmatpush1.bf16.xpose.msra.mxu0 %v1987_v51  ;;  %v1933_v32 = vmax.f32 %v2315_v3, 0.0  ;;  %v1935_v14 = vmax.f32 %v2347_v4, 0.0 }
 0x23c   :  { %v2318_v59 = vadd.f32 %v1638_v30, %v3191_v40  ;;  %v2350_v13 = vadd.f32 %v1864_v27, %v3195_v45  ;;  %v1934_v18 = vmax.f32 %v2316_v28, 0.0  ;;  %v1936_v19 = vmax.f32 %v2348_v8, 0.0 }
 0x23d   :  { %v1937_v16 = vmax.f32 %v2317_v11, 0.0  ;;  %v1939_v17 = vmax.f32 %v2349_v12, 0.0 }
 0x23e   :  { %v1938_v20 = vmax.f32 %v2318_v59, 0.0  ;;  %v1940_v21 = vmax.f32 %v2350_v13, 0.0 }
 0x23f   :  { %v1989_v22 = vpack.c.bf16 %v1937_v16, %v1933_v32  ;;  %v1991_v23 = vpack.c.bf16 %v1939_v17, %v1935_v14 }
 0x240   :  { %v1990_v24 = vpack.c.bf16 %v1938_v20, %v1934_v18  ;;  %v1992_v25 = vpack.c.bf16 %v1940_v21, %v1936_v19  ;;  %v1642_v26 = vpop.f32.mrb[44].mxu0  ;;  %v1868_v33 = vpop.f32.mrb[44].mxu1 }
 0x241   :  { %v2319_v34 = vadd.f32 %v1642_v26, %v3183_v54  ;;  %v2351_v35 = vadd.f32 %v1868_v33, %v3187_v62  ;;  %v1644_v36 = vpop.f32.mrb[45].mxu0  ;;  %v1870_v38 = vpop.f32.mrb[45].mxu1 }
 0x242   :  { %v2320_v39 = vadd.f32 %v1644_v36, %v3191_v40  ;;  %v2352_v41 = vadd.f32 %v1870_v38, %v3195_v45  ;;  %v1646_v42 = vpop.f32.mrb[46].mxu0  ;;  %v1872_v43 = vpop.f32.mrb[46].mxu1  ;;  %2039 = vmatprep.subr.bf16.mxu1 %v1990_v24  ;;  %2079 = vmatprep.subr.bf16.mxu0 %v1992_v25 }
 0x243   :  { %v2321_v44 = vadd.f32 %v1646_v42, %v3183_v54  ;;  %v2353_v46 = vadd.f32 %v1872_v43, %v3187_v62  ;;  %v1648_v47 = vpop.f32.mrb[47].mxu0  ;;  %v1874_v48 = vpop.f32.mrb[47].mxu1  ;;  %2040 = vmatpush1.bf16.xpose.msra.mxu1 %v1989_v22  ;;  %2080 = vmatpush1.bf16.xpose.msra.mxu0 %v1991_v23  ;;  %v1941_v52 = vmax.f32 %v2319_v34, 0.0  ;;  %v1943_v53 = vmax.f32 %v2351_v35, 0.0 }
 0x244   :  { %v2322_v49 = vadd.f32 %v1648_v47, %v3191_v40  ;;  %v2354_v50 = vadd.f32 %v1874_v48, %v3195_v45  ;;  %v1942_v58 = vmax.f32 %v2320_v39, 0.0  ;;  %v1944_v60 = vmax.f32 %v2352_v41, 0.0 }
 0x245   :  { %v1945_v57 = vmax.f32 %v2321_v44, 0.0  ;;  %v1947_v55 = vmax.f32 %v2353_v46, 0.0 }
 0x246   :  { %v1946_v61 = vmax.f32 %v2322_v49, 0.0  ;;  %v1948_v63 = vmax.f32 %v2354_v50, 0.0 }
 0x247   :  { %v1993_v0 = vpack.c.bf16 %v1945_v57, %v1941_v52  ;;  %v1995_v1 = vpack.c.bf16 %v1947_v55, %v1943_v53 }
 0x248   :  { %v1994_v2 = vpack.c.bf16 %v1946_v61, %v1942_v58  ;;  %v1996_v51 = vpack.c.bf16 %v1948_v63, %v1944_v60  ;;  %v1652_v29 = vpop.f32.mrb[48].mxu0  ;;  %v1878_v37 = vpop.f32.mrb[48].mxu1 }
 0x249   :  { %v2323_v10 = vadd.f32 %v1652_v29, %v3183_v54  ;;  %v2355_v15 = vadd.f32 %v1878_v37, %v3187_v62  ;;  %v1654_v3 = vpop.f32.mrb[49].mxu0  ;;  %v1880_v4 = vpop.f32.mrb[49].mxu1 }
 0x24a   :  { %v2324_v6 = vadd.f32 %v1654_v3, %v3191_v40  ;;  %v2356_v31 = vadd.f32 %v1880_v4, %v3195_v45  ;;  %v1656_v28 = vpop.f32.mrb[50].mxu0  ;;  %v1882_v8 = vpop.f32.mrb[50].mxu1  ;;  %2041 = vmatprep.subr.bf16.mxu1 %v1994_v2  ;;  %2081 = vmatprep.subr.bf16.mxu0 %v1996_v51 }
 0x24b   :  { %v2325_v9 = vadd.f32 %v1656_v28, %v3183_v54  ;;  %v2357_v56 = vadd.f32 %v1882_v8, %v3187_v62  ;;  %v1658_v11 = vpop.f32.mrb[51].mxu0  ;;  %v1884_v12 = vpop.f32.mrb[51].mxu1  ;;  %2042 = vmatpush1.bf16.xpose.msra.mxu1 %v1993_v0  ;;  %2082 = vmatpush1.bf16.xpose.msra.mxu0 %v1995_v1  ;;  %v1949_v59 = vmax.f32 %v2323_v10, 0.0  ;;  %v1951_v13 = vmax.f32 %v2355_v15, 0.0 }
 0x24c   :  { %v2326_v30 = vadd.f32 %v1658_v11, %v3191_v40  ;;  %v2358_v27 = vadd.f32 %v1884_v12, %v3195_v45  ;;  %v1950_v16 = vmax.f32 %v2324_v6, 0.0  ;;  %v1952_v17 = vmax.f32 %v2356_v31, 0.0 }
 0x24d   :  { %v1953_v32 = vmax.f32 %v2325_v9, 0.0  ;;  %v1955_v14 = vmax.f32 %v2357_v56, 0.0 }
 0x24e   :  { %v1954_v18 = vmax.f32 %v2326_v30, 0.0  ;;  %v1956_v19 = vmax.f32 %v2358_v27, 0.0 }
 0x24f   :  { %v1997_v20 = vpack.c.bf16 %v1953_v32, %v1949_v59  ;;  %v1999_v21 = vpack.c.bf16 %v1955_v14, %v1951_v13 }
 0x250   :  { %v1998_v22 = vpack.c.bf16 %v1954_v18, %v1950_v16  ;;  %v2000_v23 = vpack.c.bf16 %v1956_v19, %v1952_v17  ;;  %v1662_v24 = vpop.f32.mrb[52].mxu0  ;;  %v1888_v25 = vpop.f32.mrb[52].mxu1 }
 0x251   :  { %v2327_v26 = vadd.f32 %v1662_v24, %v3183_v54  ;;  %v2359_v33 = vadd.f32 %v1888_v25, %v3187_v62  ;;  %v1664_v34 = vpop.f32.mrb[53].mxu0  ;;  %v1890_v35 = vpop.f32.mrb[53].mxu1 }
 0x252   :  { %v2328_v36 = vadd.f32 %v1664_v34, %v3191_v40  ;;  %v2360_v38 = vadd.f32 %v1890_v35, %v3195_v45  ;;  %v1666_v39 = vpop.f32.mrb[54].mxu0  ;;  %v1892_v41 = vpop.f32.mrb[54].mxu1  ;;  %2043 = vmatprep.subr.bf16.mxu1 %v1998_v22  ;;  %2083 = vmatprep.subr.bf16.mxu0 %v2000_v23 }
 0x253   :  { %v2329_v42 = vadd.f32 %v1666_v39, %v3183_v54  ;;  %v2361_v43 = vadd.f32 %v1892_v41, %v3187_v62  ;;  %v1668_v44 = vpop.f32.mrb[55].mxu0  ;;  %v1894_v46 = vpop.f32.mrb[55].mxu1  ;;  %2044 = vmatpush1.bf16.xpose.msra.mxu1 %v1997_v20  ;;  %2084 = vmatpush1.bf16.xpose.msra.mxu0 %v1999_v21  ;;  %v1957_v49 = vmax.f32 %v2327_v26, 0.0  ;;  %v1959_v50 = vmax.f32 %v2359_v33, 0.0 }
 0x254   :  { %v2330_v47 = vadd.f32 %v1668_v44, %v3191_v40  ;;  %v2362_v48 = vadd.f32 %v1894_v46, %v3195_v45  ;;  %v1958_v57 = vmax.f32 %v2328_v36, 0.0  ;;  %v1960_v55 = vmax.f32 %v2360_v38, 0.0 }
 0x255   :  { %v1961_v52 = vmax.f32 %v2329_v42, 0.0  ;;  %v1963_v53 = vmax.f32 %v2361_v43, 0.0 }
 0x256   :  { %v1962_v58 = vmax.f32 %v2330_v47, 0.0  ;;  %v1964_v60 = vmax.f32 %v2362_v48, 0.0 }
 0x257   :  { %v2001_v61 = vpack.c.bf16 %v1961_v52, %v1957_v49  ;;  %v2003_v63 = vpack.c.bf16 %v1963_v53, %v1959_v50 }
 0x258   :  { %v2002_v0 = vpack.c.bf16 %v1962_v58, %v1958_v57  ;;  %v2004_v1 = vpack.c.bf16 %v1964_v60, %v1960_v55  ;;  %v1672_v2 = vpop.f32.mrb[56].mxu0  ;;  %v1898_v51 = vpop.f32.mrb[56].mxu1 }
 0x259   :  { %v2331_v29 = vadd.f32 %v1672_v2, %v3183_v54  ;;  %v2363_v37 = vadd.f32 %v1898_v51, %v3187_v62  ;;  %v1674_v10 = vpop.f32.mrb[57].mxu0  ;;  %v1900_v15 = vpop.f32.mrb[57].mxu1 }
 0x25a   :  { %v2332_v3 = vadd.f32 %v1674_v10, %v3191_v40  ;;  %v2364_v4 = vadd.f32 %v1900_v15, %v3195_v45  ;;  %v1676_v6 = vpop.f32.mrb[58].mxu0  ;;  %v1902_v31 = vpop.f32.mrb[58].mxu1  ;;  %2045 = vmatprep.subr.bf16.mxu1 %v2002_v0  ;;  %2085 = vmatprep.subr.bf16.mxu0 %v2004_v1 }
 0x25b   :  { %v2333_v28 = vadd.f32 %v1676_v6, %v3183_v54  ;;  %v2365_v8 = vadd.f32 %v1902_v31, %v3187_v62  ;;  %v1678_v9 = vpop.f32.mrb[59].mxu0  ;;  %v1904_v56 = vpop.f32.mrb[59].mxu1  ;;  %2046 = vmatpush1.bf16.xpose.msra.mxu1 %v2001_v61  ;;  %2086 = vmatpush1.bf16.xpose.msra.mxu0 %v2003_v63  ;;  %v1965_v30 = vmax.f32 %v2331_v29, 0.0  ;;  %v1967_v27 = vmax.f32 %v2363_v37, 0.0 }
 0x25c   :  { %v2334_v11 = vadd.f32 %v1678_v9, %v3191_v40  ;;  %v2366_v12 = vadd.f32 %v1904_v56, %v3195_v45  ;;  %v1966_v32 = vmax.f32 %v2332_v3, 0.0  ;;  %v1968_v14 = vmax.f32 %v2364_v4, 0.0  ;;  %v2019_v61 = vpop.permute.xlu0 %2018 }
 0x25d   :  { %v1969_v59 = vmax.f32 %v2333_v28, 0.0  ;;  %v1971_v13 = vmax.f32 %v2365_v8, 0.0 }
 0x25e   :  { %v1970_v16 = vmax.f32 %v2334_v11, 0.0  ;;  %v1972_v17 = vmax.f32 %v2366_v12, 0.0 }
 0x25f   :  { %v2005_v18 = vpack.c.bf16 %v1969_v59, %v1965_v30  ;;  %v2007_v19 = vpack.c.bf16 %v1971_v13, %v1967_v27 }
 0x260   :  { %v2006_v20 = vpack.c.bf16 %v1970_v16, %v1966_v32  ;;  %v2008_v21 = vpack.c.bf16 %v1972_v17, %v1968_v14  ;;  %v1682_v22 = vpop.f32.mrb[60].mxu0  ;;  %v1908_v23 = vpop.f32.mrb[60].mxu1 }
 0x261   :  { %v2335_v24 = vadd.f32 %v1682_v22, %v3183_v54  ;;  %v2367_v25 = vadd.f32 %v1908_v23, %v3187_v62  ;;  %v1684_v26 = vpop.f32.mrb[61].mxu0  ;;  %v1910_v33 = vpop.f32.mrb[61].mxu1 }
 0x262   :  { %v2336_v34 = vadd.f32 %v1684_v26, %v3191_v40  ;;  %v2368_v35 = vadd.f32 %v1910_v33, %v3195_v45  ;;  %v1686_v36 = vpop.f32.mrb[62].mxu0  ;;  %v1912_v38 = vpop.f32.mrb[62].mxu1  ;;  %2047 = vmatprep.subr.bf16.mxu1 %v2006_v20  ;;  %2087 = vmatprep.subr.bf16.mxu0 %v2008_v21 }
 0x263   :  { %v2337_v39 = vadd.f32 %v1686_v36, %v3183_v54  ;;  %v2369_v41 = vadd.f32 %v1912_v38, %v3187_v62  ;;  %v1688_v42 = vpop.f32.mrb[63].mxu0  ;;  %v1914_v43 = vpop.f32.mrb[63].mxu1  ;;  %2048 = vmatpush1.bf16.xpose.msra.mxu1 %v2005_v18  ;;  %2088 = vmatpush1.bf16.xpose.msra.mxu0 %v2007_v19  ;;  %v1973_v47 = vmax.f32 %v2335_v24, 0.0  ;;  %v1975_v48 = vmax.f32 %v2367_v25, 0.0 }
 0x264   :  { %v2338_v44 = vadd.f32 %v1688_v42, %v3191_v40  ;;  %v2370_v46 = vadd.f32 %v1914_v43, %v3195_v45  ;;  %v1974_v52 = vmax.f32 %v2336_v34, 0.0  ;;  %v1976_v53 = vmax.f32 %v2368_v35, 0.0 }
 0x265   :  { %v1977_v49 = vmax.f32 %v2337_v39, 0.0  ;;  %v1979_v50 = vmax.f32 %v2369_v41, 0.0  ;;  %v2303_v40 = vcombine.low %v3164_v5, %v3164_v5  ;;  %v2305_v45 = vcombine.low %v3169_v7, %v3169_v7 }
 0x266   :  { %v1978_v57 = vmax.f32 %v2338_v44, 0.0  ;;  %v1980_v55 = vmax.f32 %v2370_v46, 0.0 }
 0x267   :  { %v2009_v58 = vpack.c.bf16 %v1977_v49, %v1973_v47  ;;  %v2011_v54 = vpack.c.bf16 %v1979_v50, %v1975_v48 }
 0x268   :  { %v2010_v60 = vpack.c.bf16 %v1978_v57, %v1974_v52  ;;  %v2012_v62 = vpack.c.bf16 %v1980_v55, %v1976_v53 }
 0x26a   :  { %2049 = vmatprep.subr.bf16.mxu1 %v2010_v60  ;;  %2089 = vmatprep.subr.bf16.mxu0 %v2012_v62 }
 0x26b   :  { %2050 = vmatpush1.bf16.xpose.msra.mxu1 %v2009_v58  ;;  %2090 = vmatpush1.bf16.xpose.msra.mxu0 %v2011_v54 }
 0x272   :  { %2068 = vmatmul.mubr.bf16.vlgmr.msra.gmra.mrb[64].mxu1 %v2303_v40  ;;  %2108 = vmatmul.mubr.bf16.vlgmr.msra.gmra.mrb[64].mxu0 %v2305_v45 }
 0x345   :  { %v2069_v63 = vpop.f32.mrb[64].mxu1  ;;  %v2109_v0 = vpop.f32.mrb[64].mxu0 }
 0x346   :  { %v2070_v1 = vadd.f32 %v2069_v63, %v2019_v61  ;;  %v2071_v2 = vpop.f32.mrb[65].mxu1  ;;  %v2111_v51 = vpop.f32.mrb[65].mxu0 }
 0x347   :  { %v2072_v29 = vpop.f32.mrb[66].mxu1  ;;  %v2112_v37 = vpop.f32.mrb[66].mxu0 }
 0x348   :  { %v2110_v10 = vadd.f32 %v2109_v0, %v2070_v1  ;;  %v2073_v15 = vpop.f32.mrb[67].mxu1  ;;  %v2113_v3 = vpop.f32.mrb[67].mxu0 }
 0x34a   :  { %2115 = vst [vmem:[%s3275_s7] sm:$0xff] %v2110_v10 }
 0x34b   :  { %2120 = vsyncpa [#allocation3], 1 }

</bundles_post_ra>
